<compile_context>
chip_gen: v7x
topology: tpu7x:2x2x1
jax: 0.10.0
libtpu: 0.0.40
codegen_flags: <defaults>
</compile_context>

<pallas_src>
import jax
import jax.numpy as jnp
from jax.experimental import pallas as pl
from jax.experimental.pallas import tpu as pltpu


def _nnue_kernel(xw_ref, xb_ref, wwt_ref, wbt_ref, bm_ref,
                 w1a_ref, w1b_ref, b1_ref, w2_ref, b2_ref,
                 w3_ref, b3_ref, o_ref):
    f32 = jnp.float32
    cdt = wwt_ref.dtype            # MXU operand dtype (f32 or bf16)

    # Mirrored layer: two independent matmuls (white / black halves), f32 acc.
    ow = jnp.dot(xw_ref[...], wwt_ref[...], preferred_element_type=f32) + bm_ref[...]
    ob = jnp.dot(xb_ref[...], wbt_ref[...], preferred_element_type=f32) + bm_ref[...]

    # fc_shared_1 on concat([ow, ob], axis=1) WITHOUT materializing the concat:
    #   [ow ob] @ W1^T == ow @ W1t_top + ob @ W1t_bot
    h1 = (jnp.dot(ow.astype(cdt), w1a_ref[...], preferred_element_type=f32)
          + jnp.dot(ob.astype(cdt), w1b_ref[...], preferred_element_type=f32)
          + b1_ref[...])
    h1 = jnp.where(h1 > 0, h1, 0.01 * h1)          # leaky_relu (slope 0.01), f32 VPU

    # fc_shared_2 + leaky_relu
    h2 = jnp.dot(h1.astype(cdt), w2_ref[...], preferred_element_type=f32) + b2_ref[...]
    h2 = jnp.where(h2 > 0, h2, 0.01 * h2)

    # fc_output (32 -> 1): VPU multiply + sublane reduce on the transposed
    # activations -> lane-dense (1, tb) row, stored with a full unmasked vst.
    h2_t = h2.T                                    # (32, tb), XLU transpose
    score = jnp.sum(h2_t * w3_ref[...], axis=0, keepdims=True) + b3_ref[...]
    o_ref[...] = jax.nn.sigmoid(score)


def nnue_forward(x, params, *, tb=256, compute_dtype=jnp.float32):
    """x: (B, input_size) float32.  Returns (B, 1) float32."""
    B, F = x.shape
    assert F % 2 == 0, "input size must be even"
    half = F // 2

    num_tiles = pl.cdiv(B, tb)
    b_pad = num_tiles * tb

    # Split the halves (and pad the batch) in the wrapper: layout plumbing.
    xw = x[:, :half]
    xb = x[:, half:]
    if b_pad != B:
        pad = ((0, b_pad - B), (0, 0))
        xw = jnp.pad(xw, pad)
        xb = jnp.pad(xb, pad)
    xw = xw.astype(compute_dtype)
    xb = xb.astype(compute_dtype)

    # Parameter glue: pre-transposed (in, out) weights; black = flip(white).
    ww = params["white_weights"]                          # (256, half)
    wwt = ww.T.astype(compute_dtype)                      # (half, 256)
    wbt = jnp.flip(ww, (0, 1)).T.astype(compute_dtype)    # (half, 256)
    bm = params["mirrored_bias"].reshape(1, -1).astype(jnp.float32)   # (1, 256)

    w1t = params["w1"].T                                  # (512, 32)
    w1t_top = w1t[:256].astype(compute_dtype)             # multiplies out_white
    w1t_bot = w1t[256:].astype(compute_dtype)             # multiplies out_black
    b1 = params["b1"].reshape(1, -1).astype(jnp.float32)  # (1, 32)

    w2t = params["w2"].T.astype(compute_dtype)            # (32, 32)
    b2 = params["b2"].reshape(1, -1).astype(jnp.float32)  # (1, 32)

    w3t = params["w3"].reshape(-1, 1).astype(jnp.float32)  # (32, 1) column (VPU path)
    b3 = params["b3"].reshape(1, 1).astype(jnp.float32)    # (1, 1)

    const = lambda i: (0, 0)
    in_specs = [
        pl.BlockSpec((tb, half), lambda i: (i, 0)),   # x_white
        pl.BlockSpec((tb, half), lambda i: (i, 0)),   # x_black
        pl.BlockSpec(wwt.shape, const),               # white weights^T
        pl.BlockSpec(wbt.shape, const),               # black weights^T
        pl.BlockSpec(bm.shape, const),                # mirrored bias
        pl.BlockSpec(w1t_top.shape, const),
        pl.BlockSpec(w1t_bot.shape, const),
        pl.BlockSpec(b1.shape, const),
        pl.BlockSpec(w2t.shape, const),
        pl.BlockSpec(b2.shape, const),
        pl.BlockSpec(w3t.shape, const),
        pl.BlockSpec(b3.shape, const),
    ]
    # Lane-dense output: (num_tiles, 1, tb), one (1, tb) row per grid step.
    out_specs = pl.BlockSpec((None, 1, tb), lambda i: (i, 0, 0))
    out_shape = jax.ShapeDtypeStruct((num_tiles, 1, tb), jnp.float32)

    itemsize = jnp.dtype(compute_dtype).itemsize
    flops_per_row = 2 * (2 * half * 256) + 2 * (512 * 32) + 2 * (32 * 32) + 2 * 32
    cost = pl.CostEstimate(
        flops=int(b_pad * flops_per_row),
        transcendentals=int(b_pad),          # sigmoid
        bytes_accessed=int(2 * b_pad * half * itemsize          # x halves
                           + 2 * half * 256 * itemsize          # mirrored weights
                           + (512 * 32 + 32 * 32) * itemsize    # fc weights
                           + b_pad * 4),                        # output
    )

    out = pl.pallas_call(
        _nnue_kernel,
        out_shape=out_shape,
        grid_spec=pltpu.PrefetchScalarGridSpec(
            num_scalar_prefetch=0,
            grid=(num_tiles,),
            in_specs=in_specs,
            out_specs=out_specs,
        ),
        compiler_params=pltpu.CompilerParams(
            dimension_semantics=("parallel",),
            vmem_limit_bytes=64 * 1024 * 1024,
        ),
        cost_estimate=cost,
    )(xw, xb, wwt, wbt, bm, w1t_top, w1t_bot, b1, w2t, b2, w3t, b3)

    return out.reshape(b_pad, 1)[:B]


def init_params(key, input_size):
    half = input_size // 2
    ks = jax.random.split(key, 8)

    # MirroredLayer: xavier_uniform white_weights (256, half), zero bias (256,)
    limit = (6.0 / (half + 256)) ** 0.5
    white_weights = jax.random.uniform(ks[0], (256, half), jnp.float32, -limit, limit)
    mirrored_bias = jnp.zeros((256,), jnp.float32)

    # PyTorch Linear default init: U(-1/sqrt(fan_in), 1/sqrt(fan_in))
    def linear(kw, kb, fan_in, fan_out):
        b = 1.0 / (fan_in ** 0.5)
        w = jax.random.uniform(kw, (fan_out, fan_in), jnp.float32, -b, b)
        bias = jax.random.uniform(kb, (fan_out,), jnp.float32, -b, b)
        return w, bias

    w1, b1 = linear(ks[1], ks[2], 512, 32)
    w2, b2 = linear(ks[3], ks[4], 32, 32)
    w3, b3 = linear(ks[5], ks[6], 32, 1)

    return dict(white_weights=white_weights, mirrored_bias=mirrored_bias,
                w1=w1, b1=b1, w2=w2, b2=b2, w3=w3, b3=b3)


def nnue_reference(x, params):
    """Pure-JAX reference mirroring the PyTorch forward exactly."""
    half = x.shape[1] // 2
    ww = params["white_weights"]
    wb = jnp.flip(ww, (0, 1))
    ow = x[:, :half] @ ww.T + params["mirrored_bias"]
    ob = x[:, half:] @ wb.T + params["mirrored_bias"]
    h = jnp.concatenate([ow, ob], axis=1)
    lrelu = lambda v: jnp.where(v > 0, v, 0.01 * v)
    h = lrelu(h @ params["w1"].T + params["b1"])
    h = lrelu(h @ params["w2"].T + params["b2"])
    return jax.nn.sigmoid(h @ params["w3"].T + params["b3"])


if __name__ == "__main__":
    key = jax.random.PRNGKey(0)
    k_param, k_x = jax.random.split(key)

    input_size = 128   # even, half = 64
    batch = 512        # two 256-row tiles -> grid length 2 (both TCs on v7x)

    params = init_params(k_param, input_size)
    x = jax.random.normal(k_x, (batch, input_size), jnp.float32)

    out = jax.block_until_ready(nnue_forward(x, params, tb=256))
    ref = jax.block_until_ready(nnue_reference(x, params))
    assert out.shape == (batch, 1)
    assert jnp.allclose(out, ref, atol=1e-4, rtol=1e-4), \
        float(jnp.max(jnp.abs(out - ref)))

    # Batch not divisible by the tile exercises the padding path.
    x2 = x[:200]
    out2 = jax.block_until_ready(nnue_forward(x2, params, tb=256))
    ref2 = jax.block_until_ready(nnue_reference(x2, params))
    assert out2.shape == (200, 1)
    assert jnp.allclose(out2, ref2, atol=1e-4, rtol=1e-4), \
        float(jnp.max(jnp.abs(out2 - ref2)))

    print("KERNEL_OK")
</pallas_src>

<mosaic_0001>
module attributes {stable_mosaic.version = 11 : i64} {
  func.func @_nnue_kernel(%arg0: i32, %arg1: memref<256x64xf32, #tpu.memory_space<vmem>>, %arg2: memref<256x64xf32, #tpu.memory_space<vmem>>, %arg3: memref<64x256xf32, #tpu.memory_space<vmem>>, %arg4: memref<64x256xf32, #tpu.memory_space<vmem>>, %arg5: memref<1x256xf32, #tpu.memory_space<vmem>>, %arg6: memref<256x32xf32, #tpu.memory_space<vmem>>, %arg7: memref<256x32xf32, #tpu.memory_space<vmem>>, %arg8: memref<1x32xf32, #tpu.memory_space<vmem>>, %arg9: memref<32x32xf32, #tpu.memory_space<vmem>>, %arg10: memref<1x32xf32, #tpu.memory_space<vmem>>, %arg11: memref<32x1xf32, #tpu.memory_space<vmem>>, %arg12: memref<1x1xf32, #tpu.memory_space<vmem>>, %arg13: memref<1x1x256xf32, #tpu.memory_space<vmem>>) attributes {dimension_semantics = [#tpu.dimension_semantics<parallel>], iteration_bounds = array<i64: 2>, scalar_prefetch = 0 : i64, scratch_operands = 0 : i64, tpu.core_type = #tpu.core_type<tc>, window_params = [{transform_indices = @transform_0, window_bounds = array<i64: 256, 64>}, {transform_indices = @transform_1, window_bounds = array<i64: 256, 64>}, {pipeline_mode = #tpu.pipeline_mode<synchronous>, transform_indices = @transform_2, window_bounds = array<i64: 64, 256>}, {pipeline_mode = #tpu.pipeline_mode<synchronous>, transform_indices = @transform_3, window_bounds = array<i64: 64, 256>}, {pipeline_mode = #tpu.pipeline_mode<synchronous>, transform_indices = @transform_4, window_bounds = array<i64: 1, 256>}, {pipeline_mode = #tpu.pipeline_mode<synchronous>, transform_indices = @transform_5, window_bounds = array<i64: 256, 32>}, {pipeline_mode = #tpu.pipeline_mode<synchronous>, transform_indices = @transform_6, window_bounds = array<i64: 256, 32>}, {pipeline_mode = #tpu.pipeline_mode<synchronous>, transform_indices = @transform_7, window_bounds = array<i64: 1, 32>}, {pipeline_mode = #tpu.pipeline_mode<synchronous>, transform_indices = @transform_8, window_bounds = array<i64: 32, 32>}, {pipeline_mode = #tpu.pipeline_mode<synchronous>, transform_indices = @transform_9, window_bounds = array<i64: 1, 32>}, {pipeline_mode = #tpu.pipeline_mode<synchronous>, transform_indices = @transform_10, window_bounds = array<i64: 32, 1>}, {pipeline_mode = #tpu.pipeline_mode<synchronous>, transform_indices = @transform_11, window_bounds = array<i64: 1, 1>}, {transform_indices = @transform_12, window_bounds = array<i64: 1, 1, 256>}]} {
    %c0 = arith.constant 0 : index
    %c0_0 = arith.constant 0 : index
    %0 = vector.load %arg1[%c0, %c0_0] : memref<256x64xf32, #tpu.memory_space<vmem>>, vector<256x64xf32>
    %c0_1 = arith.constant 0 : index
    %c0_2 = arith.constant 0 : index
    %1 = vector.load %arg3[%c0_1, %c0_2] : memref<64x256xf32, #tpu.memory_space<vmem>>, vector<64x256xf32>
    %cst = arith.constant dense<0.000000e+00> : vector<256x256xf32>
    %2 = tpu.matmul %0, %1, %cst {dimension_numbers = #tpu.dot_dimension_numbers<[1], [0], [0], [1], [0, 0, 1, 1], [], []>} : vector<256x64xf32>, vector<64x256xf32>, vector<256x256xf32> -> vector<256x256xf32>
    %c0_3 = arith.constant 0 : index
    %c0_4 = arith.constant 0 : index
    %3 = vector.load %arg5[%c0_3, %c0_4] : memref<1x256xf32, #tpu.memory_space<vmem>>, vector<1x256xf32>
    %4 = vector.broadcast %3 : vector<1x256xf32> to vector<256x256xf32>
    %5 = arith.addf %2, %4 : vector<256x256xf32>
    %c0_5 = arith.constant 0 : index
    %c0_6 = arith.constant 0 : index
    %6 = vector.load %arg2[%c0_5, %c0_6] : memref<256x64xf32, #tpu.memory_space<vmem>>, vector<256x64xf32>
    %c0_7 = arith.constant 0 : index
    %c0_8 = arith.constant 0 : index
    %7 = vector.load %arg4[%c0_7, %c0_8] : memref<64x256xf32, #tpu.memory_space<vmem>>, vector<64x256xf32>
    %cst_9 = arith.constant dense<0.000000e+00> : vector<256x256xf32>
    %8 = tpu.matmul %6, %7, %cst_9 {dimension_numbers = #tpu.dot_dimension_numbers<[1], [0], [0], [1], [0, 0, 1, 1], [], []>} : vector<256x64xf32>, vector<64x256xf32>, vector<256x256xf32> -> vector<256x256xf32>
    %c0_10 = arith.constant 0 : index
    %c0_11 = arith.constant 0 : index
    %9 = vector.load %arg5[%c0_10, %c0_11] : memref<1x256xf32, #tpu.memory_space<vmem>>, vector<1x256xf32>
    %10 = vector.broadcast %9 : vector<1x256xf32> to vector<256x256xf32>
    %11 = arith.addf %8, %10 : vector<256x256xf32>
    %c0_12 = arith.constant 0 : index
    %c0_13 = arith.constant 0 : index
    %12 = vector.load %arg6[%c0_12, %c0_13] : memref<256x32xf32, #tpu.memory_space<vmem>>, vector<256x32xf32>
    %cst_14 = arith.constant dense<0.000000e+00> : vector<256x32xf32>
    %13 = tpu.matmul %5, %12, %cst_14 {dimension_numbers = #tpu.dot_dimension_numbers<[1], [0], [0], [1], [0, 0, 1, 1], [], []>} : vector<256x256xf32>, vector<256x32xf32>, vector<256x32xf32> -> vector<256x32xf32>
    %c0_15 = arith.constant 0 : index
    %c0_16 = arith.constant 0 : index
    %14 = vector.load %arg7[%c0_15, %c0_16] : memref<256x32xf32, #tpu.memory_space<vmem>>, vector<256x32xf32>
    %cst_17 = arith.constant dense<0.000000e+00> : vector<256x32xf32>
    %15 = tpu.matmul %11, %14, %cst_17 {dimension_numbers = #tpu.dot_dimension_numbers<[1], [0], [0], [1], [0, 0, 1, 1], [], []>} : vector<256x256xf32>, vector<256x32xf32>, vector<256x32xf32> -> vector<256x32xf32>
    %16 = arith.addf %13, %15 : vector<256x32xf32>
    %c0_18 = arith.constant 0 : index
    %c0_19 = arith.constant 0 : index
    %17 = vector.load %arg8[%c0_18, %c0_19] : memref<1x32xf32, #tpu.memory_space<vmem>>, vector<1x32xf32>
    %18 = vector.broadcast %17 : vector<1x32xf32> to vector<256x32xf32>
    %19 = arith.addf %16, %18 : vector<256x32xf32>
    %cst_20 = arith.constant 0.000000e+00 : f32
    %20 = vector.broadcast %cst_20 : f32 to vector<256x32xf32>
    %21 = arith.cmpf ogt, %19, %20 : vector<256x32xf32>
    %cst_21 = arith.constant 0.00999999977 : f32
    %22 = vector.broadcast %cst_21 : f32 to vector<256x32xf32>
    %23 = arith.mulf %22, %19 : vector<256x32xf32>
    %24 = arith.select %21, %19, %23 : vector<256x32xi1>, vector<256x32xf32>
    %c0_22 = arith.constant 0 : index
    %c0_23 = arith.constant 0 : index
    %25 = vector.load %arg9[%c0_22, %c0_23] : memref<32x32xf32, #tpu.memory_space<vmem>>, vector<32x32xf32>
    %cst_24 = arith.constant dense<0.000000e+00> : vector<256x32xf32>
    %26 = tpu.matmul %24, %25, %cst_24 {dimension_numbers = #tpu.dot_dimension_numbers<[1], [0], [0], [1], [0, 0, 1, 1], [], []>} : vector<256x32xf32>, vector<32x32xf32>, vector<256x32xf32> -> vector<256x32xf32>
    %c0_25 = arith.constant 0 : index
    %c0_26 = arith.constant 0 : index
    %27 = vector.load %arg10[%c0_25, %c0_26] : memref<1x32xf32, #tpu.memory_space<vmem>>, vector<1x32xf32>
    %28 = vector.broadcast %27 : vector<1x32xf32> to vector<256x32xf32>
    %29 = arith.addf %26, %28 : vector<256x32xf32>
    %cst_27 = arith.constant 0.000000e+00 : f32
    %30 = vector.broadcast %cst_27 : f32 to vector<256x32xf32>
    %31 = arith.cmpf ogt, %29, %30 : vector<256x32xf32>
    %cst_28 = arith.constant 0.00999999977 : f32
    %32 = vector.broadcast %cst_28 : f32 to vector<256x32xf32>
    %33 = arith.mulf %32, %29 : vector<256x32xf32>
    %34 = arith.select %31, %29, %33 : vector<256x32xi1>, vector<256x32xf32>
    %35 = tpu.transpose %34, [1, 0] : vector<256x32xf32> -> vector<32x256xf32>
    %c0_29 = arith.constant 0 : index
    %c0_30 = arith.constant 0 : index
    %36 = vector.load %arg11[%c0_29, %c0_30] : memref<32x1xf32, #tpu.memory_space<vmem>>, vector<32x1xf32>
    %37 = vector.broadcast %36 : vector<32x1xf32> to vector<32x256xf32>
    %38 = arith.mulf %35, %37 : vector<32x256xf32>
    %cst_31 = arith.constant dense<0.000000e+00> : vector<256xf32>
    %39 = vector.multi_reduction <add>, %38, %cst_31 [0] : vector<32x256xf32> to vector<256xf32>
    %40 = vector.shape_cast %39 : vector<256xf32> to vector<1x256xf32>
    %c0_32 = arith.constant 0 : index
    %c0_33 = arith.constant 0 : index
    %41 = vector.load %arg12[%c0_32, %c0_33] : memref<1x1xf32, #tpu.memory_space<vmem>>, vector<1x1xf32>
    %42 = vector.broadcast %41 : vector<1x1xf32> to vector<1x256xf32>
    %43 = arith.addf %40, %42 : vector<1x256xf32>
    %44 = arith.negf %43 : vector<1x256xf32>
    %45 = math.exp %44 : vector<1x256xf32>
    %cst_34 = arith.constant 1.000000e+00 : f32
    %46 = vector.broadcast %cst_34 : f32 to vector<1x256xf32>
    %47 = arith.addf %46, %45 : vector<1x256xf32>
    %48 = arith.divf %46, %47 : vector<1x256xf32>
    %c0_35 = arith.constant 0 : index
    %c0_36 = arith.constant 0 : index
    %c0_37 = arith.constant 0 : index
    %49 = vector.load %arg13[%c0_35, %c0_36, %c0_37] : memref<1x1x256xf32, #tpu.memory_space<vmem>>, vector<1x1x256xf32>
    %50 = vector.shape_cast %49 : vector<1x1x256xf32> to vector<1x256xf32>
    %51 = vector.shape_cast %48 : vector<1x256xf32> to vector<1x1x256xf32>
    tpu.vector_store %arg13[%c0_35, %c0_36, %c0_37], %51 {strides = array<i32>} : memref<1x1x256xf32, #tpu.memory_space<vmem>>, vector<1x1x256xf32>,
    return
  }
  func.func @transform_0(%arg0: i32) -> (i32, i32) {
    %c0_i32 = arith.constant 0 : i32
    %c0_i32_0 = arith.constant 0 : i32
    return %arg0, %c0_i32 : i32, i32
  }
  func.func @transform_1(%arg0: i32) -> (i32, i32) {
    %c0_i32 = arith.constant 0 : i32
    %c0_i32_0 = arith.constant 0 : i32
    return %arg0, %c0_i32 : i32, i32
  }
  func.func @transform_2(%arg0: i32) -> (i32, i32) {
    %c0_i32 = arith.constant 0 : i32
    %c0_i32_0 = arith.constant 0 : i32
    %c0_i32_1 = arith.constant 0 : i32
    return %c0_i32, %c0_i32_0 : i32, i32
  }
  func.func @transform_3(%arg0: i32) -> (i32, i32) {
    %c0_i32 = arith.constant 0 : i32
    %c0_i32_0 = arith.constant 0 : i32
    %c0_i32_1 = arith.constant 0 : i32
    return %c0_i32, %c0_i32_0 : i32, i32
  }
  func.func @transform_4(%arg0: i32) -> (i32, i32) {
    %c0_i32 = arith.constant 0 : i32
    %c0_i32_0 = arith.constant 0 : i32
    %c0_i32_1 = arith.constant 0 : i32
    return %c0_i32, %c0_i32_0 : i32, i32
  }
  func.func @transform_5(%arg0: i32) -> (i32, i32) {
    %c0_i32 = arith.constant 0 : i32
    %c0_i32_0 = arith.constant 0 : i32
    %c0_i32_1 = arith.constant 0 : i32
    return %c0_i32, %c0_i32_0 : i32, i32
  }
  func.func @transform_6(%arg0: i32) -> (i32, i32) {
    %c0_i32 = arith.constant 0 : i32
    %c0_i32_0 = arith.constant 0 : i32
    %c0_i32_1 = arith.constant 0 : i32
    return %c0_i32, %c0_i32_0 : i32, i32
  }
  func.func @transform_7(%arg0: i32) -> (i32, i32) {
    %c0_i32 = arith.constant 0 : i32
    %c0_i32_0 = arith.constant 0 : i32
    %c0_i32_1 = arith.constant 0 : i32
    return %c0_i32, %c0_i32_0 : i32, i32
  }
  func.func @transform_8(%arg0: i32) -> (i32, i32) {
    %c0_i32 = arith.constant 0 : i32
    %c0_i32_0 = arith.constant 0 : i32
    %c0_i32_1 = arith.constant 0 : i32
    return %c0_i32, %c0_i32_0 : i32, i32
  }
  func.func @transform_9(%arg0: i32) -> (i32, i32) {
    %c0_i32 = arith.constant 0 : i32
    %c0_i32_0 = arith.constant 0 : i32
    %c0_i32_1 = arith.constant 0 : i32
    return %c0_i32, %c0_i32_0 : i32, i32
  }
  func.func @transform_10(%arg0: i32) -> (i32, i32) {
    %c0_i32 = arith.constant 0 : i32
    %c0_i32_0 = arith.constant 0 : i32
    %c0_i32_1 = arith.constant 0 : i32
    return %c0_i32, %c0_i32_0 : i32, i32
  }
  func.func @transform_11(%arg0: i32) -> (i32, i32) {
    %c0_i32 = arith.constant 0 : i32
    %c0_i32_0 = arith.constant 0 : i32
    %c0_i32_1 = arith.constant 0 : i32
    return %c0_i32, %c0_i32_0 : i32, i32
  }
  func.func @transform_12(%arg0: i32) -> (i32, i32, i32) {
    %c0_i32 = arith.constant 0 : i32
    %c0_i32_0 = arith.constant 0 : i32
    %c0_i32_1 = arith.constant 0 : i32
    return %arg0, %c0_i32, %c0_i32_0 : i32, i32, i32
  }
}

</mosaic_0001>

<bundles_post_ra>
// kernel: tpu_custom_call.1
= control target key start
LH: loop header
LB: loop body
LE: loop exit
PB: predicated region body
PF: predicated region fallthrough
CT: control target
= control target key end

     0   :  { %s4915_s0 = inlined_call_operand.hbm [shape: f32[512,64], index: 0, kind: input, shape index: {}]   ;;  %s4916_s1 = inlined_call_operand.hbm [shape: f32[512,64], index: 1, kind: input, shape index: {}]   ;;  %s4917_s2 = inlined_call_operand.hbm [shape: f32[64,256], index: 2, kind: input, shape index: {}]   ;;  %s4918_s3 = inlined_call_operand.hbm [shape: f32[64,256], index: 3, kind: input, shape index: {}]   ;;  %s4919_s4 = inlined_call_operand.hbm [shape: f32[1,256], index: 4, kind: input, shape index: {}]   ;;  %s4920_s5 = inlined_call_operand.hbm [shape: f32[256,32], index: 5, kind: input, shape index: {}]   ;;  %s4921_s6 = inlined_call_operand.hbm [shape: f32[256,32], index: 6, kind: input, shape index: {}]   ;;  %s4922_s7 = inlined_call_operand.hbm [shape: f32[1,32], index: 7, kind: input, shape index: {}]   ;;  %s4923_s8 = inlined_call_operand.hbm [shape: f32[32,32], index: 8, kind: input, shape index: {}]   ;;  %s4924_s9 = inlined_call_operand.hbm [shape: f32[1,32], index: 9, kind: input, shape index: {}]   ;;  %s4925_s10 = inlined_call_operand.hbm [shape: f32[32,1], index: 10, kind: input, shape index: {}]   ;;  %s4926_s11 = inlined_call_operand.<no memory space> [shape: f32[1,1], index: 11, kind: input, shape index: {}]   ;;  %s4927_s12 = inlined_call_operand.hbm [shape: f32[2,1,256], index: 12, kind: output, shape index: {}]  }
   0x1   :  { %4938 = sst [smem:[#allocation31_spill]] %s4915_s0  ;;  %v17_v0 = vstv %s4926_s11 }
   0x2   :  { %4939 = sst [smem:[#allocation32_spill]] %s4916_s1  ;;  %18 = vst [vmem:[#allocation2] sm:$0x1] %v17_v0 }
   0x3   :  { %4940 = sst [smem:[#allocation33_spill]] %s4917_s2 }
   0x4   :  { %4941 = sst [smem:[#allocation34_spill]] %s4918_s3 }
   0x5   :  { %4942 = sst [smem:[#allocation35_spill]] %s4919_s4 }
   0x6   :  { %4943 = sst [smem:[#allocation36_spill]] %s4920_s5 }
   0x7   :  { %4944 = sst [smem:[#allocation37_spill]] %s4921_s6 }
   0x8   :  { %4945 = sst [smem:[#allocation38_spill]] %s4922_s7 }
   0x9   :  { %4946 = sst [smem:[#allocation39_spill]] %s4923_s8 }
   0xa   :  { %4947 = sst [smem:[#allocation40_spill]] %s4927_s12 }
   0xb   :  { %19 = vsyncpa [#allocation4], 0 }
   0xc   :  { %21 = vsyncpa [#allocation4 + $0x1], 0 }
   0xd   :  { %22 = vsyncpa [#allocation7], 0 }
   0xe   :  { %24 = vsyncpa [#allocation7 + $0x1], 0 }
   0xf   :  { %25 = vsyncpa [#allocation10], 0 }
  0x10   :  { %26 = vsyncpa [#allocation13], 0 }
  0x11   :  { %27 = vsyncpa [#allocation16], 0 }
  0x12   :  { %28 = vsyncpa [#allocation19], 0 }
  0x13   :  { %29 = vsyncpa [#allocation5], 0 }
  0x14   :  { %31 = vsyncpa [#allocation5 + $0x1], 0  ;;  %s3874_s23 = smov 0   ;;  %s3876_s24 = smov 0  }
  0x15   :  { %s3878_s25 = smov 0   ;;  %s3880_s26 = smov 0  }
  0x16 LB: > { %s3786_s11 = smov [#allocation8]   ;;  %s3895_s28 = sadd.s32 4294967295, %s3784_s26   ;;  %s3784_s26 = sphi %s3880_s26, %s4987_s26   ;;  %s3780_s25 = sphi %s3878_s25, %s4986_s25   ;;  %s3776_s24 = sphi %s3876_s24, %s4985_s24   ;;  %s3772_s23 = sphi %s3874_s23, %s4984_s23  }
  0x17   : > { %s342_s27 = sshll.u32 %s3786_s11, 4  ;;  %p2848_p0 = scmp.ge.s32.totalorder %s3784_s26, 1  ;;  %s3900_s27 = int_to_ptr.vmem [resolvable:$true] %s342_s27 }
  0x18   : > { %p4931_p1 = scmp.eq.s32.totalorder %s3895_s28, 0  ;;  %p330_p2 = scmp.lt.s32.totalorder %s3784_s26, 3 }
  0x19   : > { %s3787_s30 = smov [#allocation9]   ;;  %s3788_s15 = smov [#allocation12]  }
  0x1a   : > { %p3902_p3 = pnand %p2848_p0, %p330_p2  ;;  %s355_s13 = sshll.u32 %s3787_s30, 4  ;;  %s3915_s13 = int_to_ptr.vmem [resolvable:$true] %s355_s13 }
  0x1b   : > { %s379_s16 = sshll.u32 %s3788_s15, 4  ;;  %s4951_s2 = sld [smem:[#allocation33_spill]]  ;;  %s3917_s16 = int_to_ptr.vmem [resolvable:$true] %s379_s16 }
  0x1c   : > { %s4948_s29 = scalar_select %p3902_p3, 1, 0 }
  0x1d   : > { %p3264_p5 = pneg %p3902_p3 }
  0x1e   : > { %4949 = sst [smem:[#allocation30_spill]] %s4948_s29 }
  0x1f   : > { %p3911_p6 = pnand %p3264_p5, %p4931_p1 }
  0x21   : > { %s3382_s19 = scalar_lea.hbm %s4951_s2, 2048  ;;  %p3927_p8 = pneg %p3911_p6 }
  0x22   : > { %p3383_p7 = scmp.ne.s32.totalorder %s4951_s2, %s3382_s19  ;;  %p3389_p11 = scmp.lt.u32.totalorder %s3382_s19, %s4951_s2 }
  0x24   : > { %p3385_p9 = pnand %p3927_p8, %p3383_p7 }
  0x26   : > { %p3386_p10 = pneg %p3385_p9 }
  0x28   : > { %p3391_p12 = pnand %p3389_p11, %p3386_p10 }
  0x2a   : > { %3394 = shalt.err (!%p3391_p12)
}
  0x2b   : > { %s3395_s15 = scalar_lea.vmem %s3900_s27, 2048  ;;  %p3403_p5 = scmp.lt.s32.totalorder %s3900_s27, %s3900_s27 }
  0x2c   : > { %p3396_p13 = scmp.ne.s32.totalorder %s3900_s27, %s3395_s15  ;;  %p3404_p4 = scmp.lt.s32.totalorder %s3395_s15, %s3395_s15 }
  0x2e   : > { %p3398_p0 = pnand %p3396_p13, %p3927_p8  ;;  %p3405_p7 = por %p3404_p4, %p3403_p5 }
  0x30   : > { %p3399_p2 = pneg %p3398_p0 }
  0x32   : > { %p3406_p9 = pnand %p3405_p7, %p3399_p2 }
  0x34   : > { %3409 = shalt.err (!%p3406_p9)
}
  0x35   : > { %s3789_s17 = smov 256   ;;  %s3790_s18 = smov 16  }
  0x36   : > { %3267 = dma.hbm_to_vmem [thread:$0]  (!%p3911_p6), %s4951_s2, 2048, %s3900_s27, [#allocation7], %s3789_s17, %s3789_s17, %s3790_s18  }
  0x37   : > { %s4953_s3 = sld [smem:[#allocation34_spill]] }
  0x3d   : > { %s3410_s30 = scalar_lea.hbm %s4953_s3, 2048 }
  0x3e   : > { %p3411_p4 = scmp.ne.s32.totalorder %s4953_s3, %s3410_s30  ;;  %p3417_p12 = scmp.lt.u32.totalorder %s3410_s30, %s4953_s3 }
  0x40   : > { %p3413_p10 = pnand %p3411_p4, %p3927_p8 }
  0x42   : > { %p3414_p11 = pneg %p3413_p10 }
  0x44   : > { %p3419_p13 = pnand %p3417_p12, %p3414_p11 }
  0x46   : > { %3422 = shalt.err (!%p3419_p13)
}
  0x47   : > { %s3423_s27 = scalar_lea.vmem %s3915_s13, 2048  ;;  %p3431_p7 = scmp.lt.s32.totalorder %s3915_s13, %s3915_s13 }
  0x48   : > { %p3424_p0 = scmp.ne.s32.totalorder %s3915_s13, %s3423_s27  ;;  %p3432_p9 = scmp.lt.s32.totalorder %s3423_s27, %s3423_s27 }
  0x4a   : > { %p3426_p2 = pnand %p3424_p0, %p3927_p8  ;;  %p3433_p4 = por %p3432_p9, %p3431_p7 }
  0x4c   : > { %p3427_p5 = pneg %p3426_p2 }
  0x4e   : > { %p3434_p10 = pnand %p3433_p4, %p3427_p5 }
  0x50   : > { %3437 = shalt.err (!%p3434_p10)
}
  0x51   : > { %3270 = dma.hbm_to_vmem [thread:$0]  (!%p3911_p6), %s4953_s3, 2048, %s3915_s13, [#allocation10], %s3789_s17, %s3789_s17, %s3790_s18  }
  0x52   : > { %s4954_s5 = sld [smem:[#allocation36_spill]] }
  0x58   : > { %s3438_s20 = scalar_lea.hbm %s4954_s5, 4096 }
  0x59   : > { %p3439_p11 = scmp.ne.s32.totalorder %s4954_s5, %s3438_s20  ;;  %p3445_p0 = scmp.lt.u32.totalorder %s3438_s20, %s4954_s5 }
  0x5b   : > { %p3441_p12 = pnand %p3439_p11, %p3927_p8 }
  0x5d   : > { %p3442_p13 = pneg %p3441_p12 }
  0x5f   : > { %p3447_p2 = pnand %p3445_p0, %p3442_p13 }
  0x61   : > { %3450 = shalt.err (!%p3447_p2)
}
  0x62   : > { %s3451_s13 = scalar_lea.vmem %s3917_s16, 4096  ;;  %p3459_p4 = scmp.lt.s32.totalorder %s3917_s16, %s3917_s16 }
  0x63   : > { %p3452_p5 = scmp.ne.s32.totalorder %s3917_s16, %s3451_s13  ;;  %p3460_p10 = scmp.lt.s32.totalorder %s3451_s13, %s3451_s13 }
  0x65   : > { %p3454_p7 = pnand %p3452_p5, %p3927_p8  ;;  %p3461_p11 = por %p3460_p10, %p3459_p4 }
  0x67   : > { %p3455_p9 = pneg %p3454_p7 }
  0x69   : > { %p3462_p12 = pnand %p3461_p11, %p3455_p9 }
  0x6b   : > { %3465 = shalt.err (!%p3462_p12)
}
  0x6c   : > { %s4933_s17 = smov 128   ;;  %s4935_s18 = smov 8  }
  0x6d   : > { %3276 = dma.hbm_to_vmem [thread:$0]  (!%p3911_p6), %s4954_s5, 4096, %s3917_s16, [#allocation13], %s4933_s17, %s4933_s17, %s4935_s18  }
  0x6e   : > { %s3793_s12 = smov [#allocation15]   ;;  %s3794_s19 = smov [#allocation18]  }
  0x6f   : > { %s406_s29 = sshll.u32 %s3793_s12, 4  ;;  %s430_s20 = sshll.u32 %s3794_s19, 4  ;;  %s407_s29 = int_to_ptr.vmem [resolvable:$true] %s406_s29  ;;  %s431_s20 = int_to_ptr.vmem [resolvable:$true] %s430_s20 }
  0x70   : > { %s4955_s7 = sld [smem:[#allocation38_spill]] }
  0x76   : > { %s3466_s30 = scalar_lea.hbm %s4955_s7, 16 }
  0x77   : > { %p3467_p13 = scmp.ne.s32.totalorder %s4955_s7, %s3466_s30  ;;  %p3473_p5 = scmp.lt.u32.totalorder %s3466_s30, %s4955_s7 }
  0x79   : > { %p3469_p0 = pnand %p3467_p13, %p3927_p8 }
  0x7b   : > { %p3470_p2 = pneg %p3469_p0 }
  0x7d   : > { %p3475_p7 = pnand %p3473_p5, %p3470_p2 }
  0x7f   : > { %3478 = shalt.err (!%p3475_p7)
}
  0x80   : > { %s3479_s16 = scalar_lea.vmem %s407_s29, 16  ;;  %s3486_s27 = scalar_lea.vmem %s407_s29, 32 }
  0x81   : > { %p3480_p9 = scmp.ne.s32.totalorder %s407_s29, %s3479_s16  ;;  %p3487_p11 = scmp.lt.s32.totalorder %s407_s29, %s407_s29 }
  0x82   : > { %p3488_p12 = scmp.lt.s32.totalorder %s3486_s27, %s3479_s16 }
  0x83   : > { %p3482_p4 = pnand %p3480_p9, %p3927_p8 }
  0x84   : > { %p3489_p1 = por %p3488_p12, %p3487_p11 }
  0x85   : > { %p3483_p10 = pneg %p3482_p4 }
  0x87   : > { %p3490_p3 = pnand %p3489_p1, %p3483_p10 }
  0x89   : > { %3493 = shalt.err (!%p3490_p3)
}
  0x8a   : > { %3282 = dma.hbm_to_vmem [thread:$0]  (!%p3911_p6), %s4955_s7, 16, %s407_s29, [#allocation16]  }
  0x8b   : > { %s3494_s19 = scalar_lea.hbm %s4924_s9, 16 }
  0x8c   : > { %p3495_p13 = scmp.ne.s32.totalorder %s4924_s9, %s3494_s19  ;;  %p3501_p3 = scmp.lt.u32.totalorder %s3494_s19, %s4924_s9 }
  0x8e   : > { %p3497_p0 = pnand %p3495_p13, %p3927_p8 }
  0x90   : > { %p3498_p1 = pneg %p3497_p0 }
  0x92   : > { %p3503_p2 = pnand %p3501_p3, %p3498_p1 }
  0x94   : > { %3506 = shalt.err (!%p3503_p2)
}
  0x95   : > { %s3507_s13 = scalar_lea.vmem %s431_s20, 16  ;;  %s3514_s29 = scalar_lea.vmem %s431_s20, 32 }
  0x96   : > { %p3508_p5 = scmp.ne.s32.totalorder %s431_s20, %s3507_s13  ;;  %p3515_p4 = scmp.lt.s32.totalorder %s431_s20, %s431_s20 }
  0x97   : > { %p3516_p10 = scmp.lt.s32.totalorder %s3514_s29, %s3507_s13 }
  0x98   : > { %p3510_p7 = pnand %p3508_p5, %p3927_p8 }
  0x99   : > { %p3517_p11 = por %p3516_p10, %p3515_p4 }
  0x9a   : > { %p3511_p9 = pneg %p3510_p7 }
  0x9c   : > { %p3518_p12 = pnand %p3517_p11, %p3511_p9 }
  0x9e   : > { %3521 = shalt.err (!%p3518_p12)
}
  0x9f   : > { %3288 = dma.hbm_to_vmem [thread:$0]  (!%p3911_p6), %s4924_s9, 16, %s431_s20, [#allocation19]  }
  0xa0   : > { %s3795_s1 = smov [#allocation11]   ;;  %s3796_s2 = smov [#allocation14]  }
  0xa1   : > { %s369_s12 = sshll.u32 %s3795_s1, 4  ;;  %s392_s3 = sshll.u32 %s3796_s2, 4  ;;  %s370_s12 = int_to_ptr.vmem [resolvable:$true] %s369_s12  ;;  %s393_s3 = int_to_ptr.vmem [resolvable:$true] %s392_s3 }
  0xa2   : > { %s4956_s4 = sld [smem:[#allocation35_spill]] }
  0xa8   : > { %s3522_s11 = scalar_lea.hbm %s4956_s4, 32 }
  0xa9   : > { %p3523_p13 = scmp.ne.s32.totalorder %s4956_s4, %s3522_s11  ;;  %p3529_p3 = scmp.lt.u32.totalorder %s3522_s11, %s4956_s4 }
  0xab   : > { %p3525_p0 = pnand %p3523_p13, %p3927_p8 }
  0xad   : > { %p3526_p1 = pneg %p3525_p0 }
  0xaf   : > { %p3531_p2 = pnand %p3529_p3, %p3526_p1 }
  0xb1   : > { %3534 = shalt.err (!%p3531_p2)
}
  0xb2   : > { %s3535_s20 = scalar_lea.vmem %s370_s12, 32  ;;  %p3543_p4 = scmp.lt.s32.totalorder %s370_s12, %s370_s12 }
  0xb3   : > { %p3536_p5 = scmp.ne.s32.totalorder %s370_s12, %s3535_s20  ;;  %p3544_p10 = scmp.lt.s32.totalorder %s3535_s20, %s3535_s20 }
  0xb5   : > { %p3538_p7 = pnand %p3536_p5, %p3927_p8  ;;  %p3545_p11 = por %p3544_p10, %p3543_p4 }
  0xb7   : > { %p3539_p9 = pneg %p3538_p7 }
  0xb9   : > { %p3546_p12 = pnand %p3545_p11, %p3539_p9 }
  0xbb   : > { %3549 = shalt.err (!%p3546_p12)
}
  0xbc   : > { %3273 = dma.hbm_to_vmem [thread:$0]  (!%p3911_p6), %s4956_s4, 32, %s370_s12, [#allocation10]  }
  0xbd   : > { %s4957_s6 = sld [smem:[#allocation37_spill]] }
  0xc3   : > { %s3550_s19 = scalar_lea.hbm %s4957_s6, 4096 }
  0xc4   : > { %p3551_p13 = scmp.ne.s32.totalorder %s4957_s6, %s3550_s19  ;;  %p3557_p3 = scmp.lt.u32.totalorder %s3550_s19, %s4957_s6 }
  0xc6   : > { %p3553_p0 = pnand %p3551_p13, %p3927_p8 }
  0xc8   : > { %p3554_p1 = pneg %p3553_p0 }
  0xca   : > { %p3559_p2 = pnand %p3557_p3, %p3554_p1 }
  0xcc   : > { %3562 = shalt.err (!%p3559_p2)
}
  0xcd   : > { %s3563_s13 = scalar_lea.vmem %s393_s3, 4096  ;;  %p3571_p4 = scmp.lt.s32.totalorder %s393_s3, %s393_s3 }
  0xce   : > { %p3564_p5 = scmp.ne.s32.totalorder %s393_s3, %s3563_s13  ;;  %p3572_p10 = scmp.lt.s32.totalorder %s3563_s13, %s3563_s13 }
  0xd0   : > { %p3566_p7 = pnand %p3564_p5, %p3927_p8  ;;  %p3573_p11 = por %p3572_p10, %p3571_p4 }
  0xd2   : > { %p3567_p9 = pneg %p3566_p7 }
  0xd4   : > { %p3574_p12 = pnand %p3573_p11, %p3567_p9 }
  0xd6   : > { %3577 = shalt.err (!%p3574_p12)
}
  0xd7   : > { %3279 = dma.hbm_to_vmem [thread:$0]  (!%p3911_p6), %s4957_s6, 4096, %s393_s3, [#allocation13], %s4933_s17, %s4933_s17, %s4935_s18  }
  0xd8   : > { %s3797_s20 = smov [#allocation17]   ;;  %s3798_s27 = smov [#allocation20]  }
  0xd9   : > { %s416_s16 = sshll.u32 %s3797_s20, 4  ;;  %s440_s1 = sshll.u32 %s3798_s27, 4  ;;  %s417_s16 = int_to_ptr.vmem [resolvable:$true] %s416_s16  ;;  %s441_s1 = int_to_ptr.vmem [resolvable:$true] %s440_s1 }
  0xda   : > { %s4958_s8 = sld [smem:[#allocation39_spill]] }
  0xe0   : > { %s3578_s21 = scalar_lea.hbm %s4958_s8, 512 }
  0xe1   : > { %p3579_p13 = scmp.ne.s32.totalorder %s4958_s8, %s3578_s21  ;;  %p3585_p3 = scmp.lt.u32.totalorder %s3578_s21, %s4958_s8 }
  0xe3   : > { %p3581_p0 = pnand %p3579_p13, %p3927_p8 }
  0xe5   : > { %p3582_p1 = pneg %p3581_p0 }
  0xe7   : > { %p3587_p2 = pnand %p3585_p3, %p3582_p1 }
  0xe9   : > { %3590 = shalt.err (!%p3587_p2)
}
  0xea   : > { %s3591_s3 = scalar_lea.vmem %s417_s16, 512  ;;  %p3599_p4 = scmp.lt.s32.totalorder %s417_s16, %s417_s16 }
  0xeb   : > { %p3592_p5 = scmp.ne.s32.totalorder %s417_s16, %s3591_s3  ;;  %p3600_p10 = scmp.lt.s32.totalorder %s3591_s3, %s3591_s3 }
  0xed   : > { %p3594_p7 = pnand %p3592_p5, %p3927_p8  ;;  %p3601_p11 = por %p3600_p10, %p3599_p4 }
  0xef   : > { %p3595_p9 = pneg %p3594_p7 }
  0xf1   : > { %p3602_p12 = pnand %p3601_p11, %p3595_p9 }
  0xf3   : > { %3605 = shalt.err (!%p3602_p12)
}
  0xf4   : > { %3285 = dma.hbm_to_vmem [thread:$0]  (!%p3911_p6), %s4958_s8, 512, %s417_s16, [#allocation16], %s4933_s17, %s4933_s17, %s4935_s18  }
  0xf5   : > { %s3606_s2 = scalar_lea.hbm %s4925_s10, 512 }
  0xf6   : > { %p3607_p13 = scmp.ne.s32.totalorder %s4925_s10, %s3606_s2  ;;  %p3613_p3 = scmp.lt.u32.totalorder %s3606_s2, %s4925_s10 }
  0xf8   : > { %p3609_p0 = pnand %p3607_p13, %p3927_p8 }
  0xfa   : > { %p3610_p1 = pneg %p3609_p0 }
  0xfc   : > { %p3615_p2 = pnand %p3613_p3, %p3610_p1 }
  0xfe   : > { %3618 = shalt.err (!%p3615_p2)
}
  0xff   : > { %s3619_s15 = scalar_lea.vmem %s441_s1, 512  ;;  %p3627_p4 = scmp.lt.s32.totalorder %s441_s1, %s441_s1 }
 0x100   : > { %p3620_p5 = scmp.ne.s32.totalorder %s441_s1, %s3619_s15  ;;  %p3628_p10 = scmp.lt.s32.totalorder %s3619_s15, %s3619_s15 }
 0x102   : > { %p3622_p7 = pnand %p3620_p5, %p3927_p8  ;;  %p3629_p11 = por %p3628_p10, %p3627_p4 }
 0x104   : > { %p3623_p9 = pneg %p3622_p7 }
 0x106   : > { %p3630_p12 = pnand %p3629_p11, %p3623_p9 }
 0x108   : > { %3633 = shalt.err (!%p3630_p12)
}
 0x109   : > { %3291 = dma.hbm_to_vmem [thread:$0]  (!%p3911_p6), %s4925_s10, 512, %s441_s1, [#allocation19], %s4933_s17, %s4933_s17, %s4935_s18  }
 0x10a   : > { %s2847_s14 = sadd.s32 4294967294, %s3784_s26   ;;  %s4116_s22 = sadd.s32 1, %s3784_s26  }
 0x10b   : > { %s44_s3 = sadd.s32 1, %s3780_s25  ;;  %s41_s12 = ssub.s32 %s3784_s26, %s4116_s22 }
 0x10c   : > { %p51_p8 = scmp.ne.s32.totalorder %s3780_s25, %s3776_s24  ;;  %p42_p13 = scmp.eq.s32.totalorder %s41_s12, 0 }
 0x10d   : > { %p52_p0 = scmp.eq.s32.totalorder %s3784_s26, 0  ;;  %p57_p1 = scmp.ne.s32.totalorder %s3776_s24, %s3772_s23 }
 0x10e   : > { %p317_p3 = scmp.eq.s32.totalorder %s3895_s28, 1  ;;  %p4959_p5 = scmp.eq.s32.totalorder %s3895_s28, 0 }
 0x10f   : > { %s4128_s29 = scalar_select %p42_p13, %s3780_s25, %s44_s3  }
 0x110   : > { %p53_p2 = por %p52_p0, %p51_p8  ;;  %p4132_p7 = por %p4959_p5, %p57_p1 }
 0x111   : > { %p4136_p6 = por %p317_p3, %p51_p8  ;;  %p323_p9 = scmp.eq.s32.totalorder %s2847_s14, 1 }
 0x112   : > { %p3312_p4 = scmp.lt.s32.totalorder %s3784_s26, 2  ;;  %s457_s27 = sand.u32 1, %s3780_s25  }
 0x113   : > { %s4961_s1 = scalar_select %p4136_p6, 1, 0 }
 0x114   : > { %p4142_p10 = por %p323_p9, %p57_p1  ;;  %s4146_s19 = sshll.u32 %s457_s27, 8 }
 0x115   : > { %s2983_s21 = sshll.u32 %s3784_s26, 12  ;;  %s4963_s0 = sld [smem:[#allocation31_spill]] }
 0x116   : > { %s4962_s2 = scalar_select %p4142_p10, 1, 0 }
 0x117   : > { %s461_s16 = scalar_lea.vmem [#allocation3], %s4146_s19  ;;  %p4155_p11 = pnand %p3312_p4, %p53_p2 }
 0x118   : > { %s468_s13 = sshll.u32 %s461_s16, 4  ;;  %s4965_s17 = sld [smem:[#allocation32_spill]]  ;;  %s4159_s13 = int_to_ptr.vmem [resolvable:$true] %s468_s13 }
 0x119   : > { %s4166_s30 = scalar_lea.sflag [#allocation4], %s457_s27  ;;  %p3636_p8 = pneg %p4155_p11 }
 0x11b   : > { %s4152_s15 = scalar_lea.hbm %s4963_s0, %s2983_s21  ;;  %s3639_s5 = scalar_lea.hbm %s4963_s0, 8192 }
 0x11c   : > { %s3634_s18 = scalar_lea.hbm %s4152_s15, 4096  ;;  %p3640_p1 = scmp.lt.u32.totalorder %s4152_s15, %s4963_s0 }
 0x11d   : > { %p3635_p12 = scmp.ne.s32.totalorder %s4152_s15, %s3634_s18  ;;  %p3641_p3 = scmp.lt.u32.totalorder %s3639_s5, %s3634_s18 }
 0x11e   : > { %s4164_s11 = scalar_lea.hbm %s4965_s17, %s2983_s21  ;;  %p3643_p5 = scmp.lt.u32.totalorder %s3634_s18, %s4152_s15 }
 0x11f   : > { %p3637_p13 = pnand %p3636_p8, %p3635_p12  ;;  %p3642_p2 = por %p3641_p3, %p3640_p1 }
 0x121   : > { %p3638_p0 = pneg %p3637_p13  ;;  %p3644_p9 = por %p3643_p5, %p3642_p2 }
 0x123   : > { %p3645_p4 = pnand %p3644_p9, %p3638_p0 }
 0x125   : > { %3648 = shalt.err (!%p3645_p4)
}
 0x126   : > { %s3649_s27 = scalar_lea.vmem %s4159_s13, 4096  ;;  %s3799_s4 = smov [#allocation3]  }
 0x127   : > { %p3650_p12 = scmp.ne.s32.totalorder %s4159_s13, %s3649_s27  ;;  %s3654_s21 = sshll.u32 %s3799_s4, 4  ;;  %s3655_s21 = int_to_ptr.vmem [resolvable:$false] %s3654_s21 }
 0x128   : > { %s3656_s6 = scalar_lea.vmem %s3655_s21, 8192  ;;  %p3657_p6 = scmp.lt.s32.totalorder %s4159_s13, %s3655_s21 }
 0x129   : > { %p3652_p13 = pnand %p3650_p12, %p3636_p8  ;;  %p3658_p1 = scmp.lt.s32.totalorder %s3656_s6, %s3649_s27 }
 0x12b   : > { %p3653_p10 = pneg %p3652_p13  ;;  %p3659_p3 = por %p3658_p1, %p3657_p6 }
 0x12d   : > { %p3660_p2 = pnand %p3659_p3, %p3653_p10 }
 0x12f   : > { %3663 = shalt.err (!%p3660_p2)
}
 0x130   : > { %s4966_s5 = smov 8   ;;  %s4967_s7 = smov 128  }
 0x131   : > { %3295 = dma.hbm_to_vmem [thread:$0]  (!%p4155_p11), %s4152_s15, 4096, %s4159_s13, %s4166_s30, %s4967_s7, %s4967_s7, %s4966_s5  }
 0x132   : > { %s482_s18 = scalar_lea.vmem [#allocation6], %s4146_s19  ;;  %s478_s12 = sand.u32 1, %s3784_s26  }
 0x133   : > { %s489_s3 = sshll.u32 %s482_s18, 4  ;;  %s4201_s16 = scalar_lea.sflag [#allocation7], %s478_s12  ;;  %s4199_s3 = int_to_ptr.vmem [resolvable:$true] %s489_s3 }
 0x134   : > { %s3664_s27 = scalar_lea.hbm %s4164_s11, 4096  ;;  %s3669_s6 = scalar_lea.hbm %s4965_s17, 8192 }
 0x135   : > { %p3665_p6 = scmp.ne.s32.totalorder %s4164_s11, %s3664_s27  ;;  %p3670_p5 = scmp.lt.u32.totalorder %s4164_s11, %s4965_s17 }
 0x136   : > { %p3671_p9 = scmp.lt.u32.totalorder %s3669_s6, %s3664_s27  ;;  %p3673_p12 = scmp.lt.u32.totalorder %s3664_s27, %s4164_s11 }
 0x137   : > { %p3667_p10 = pnand %p3665_p6, %p3636_p8 }
 0x138   : > { %p3672_p4 = por %p3671_p9, %p3670_p5 }
 0x139   : > { %p3668_p0 = pneg %p3667_p10 }
 0x13a   : > { %p3674_p13 = por %p3673_p12, %p3672_p4 }
 0x13c   : > { %p3675_p1 = pnand %p3674_p13, %p3668_p0 }
 0x13e   : > { %3678 = shalt.err (!%p3675_p1)
}
 0x13f   : > { %s3679_s19 = scalar_lea.vmem %s4199_s3, 4096  ;;  %s3800_s15 = smov [#allocation6]  }
 0x140   : > { %p3680_p3 = scmp.ne.s32.totalorder %s4199_s3, %s3679_s19  ;;  %s3684_s13 = sshll.u32 %s3800_s15, 4  ;;  %s3685_s13 = int_to_ptr.vmem [resolvable:$false] %s3684_s13 }
 0x141   : > { %s3686_s0 = scalar_lea.vmem %s3685_s13, 8192  ;;  %p3687_p10 = scmp.lt.s32.totalorder %s4199_s3, %s3685_s13 }
 0x142   : > { %p3682_p2 = pnand %p3680_p3, %p3636_p8  ;;  %p3688_p5 = scmp.lt.s32.totalorder %s3686_s0, %s3679_s19 }
 0x144   : > { %p3683_p6 = pneg %p3682_p2  ;;  %p3689_p9 = por %p3688_p5, %p3687_p10 }
 0x146   : > { %p3690_p4 = pnand %p3689_p9, %p3683_p6 }
 0x148   : > { %3693 = shalt.err (!%p3690_p4)
}
 0x149   : > { %3298 = dma.hbm_to_vmem [thread:$0]  (!%p4155_p11), %s4164_s11, 4096, %s4199_s3, %s4201_s16, %s4967_s7, %s4967_s7, %s4966_s5  }
 0x14a   : > { %s4968_s8 = sld [smem:[#allocation30_spill]] }
 0x150   : > { %p4969_p8 = scmp.ne.s32.totalorder %s4968_s8, 0 }
 0x151   : > { %s4233_s30 = sand.u32 (!%p4969_p8), 1, %s3776_s24  }
 0x152   : > { %501 = sbr.rel (%p4969_p8) target bundleno = 1342 (0x53e), region = 68  ;;  %s2866_s18 = sshll.u32 (!%p4969_p8), %s4233_s30, 8 }
 0x153   : > { %s504_s12 = scalar_lea.sflag (!%p4969_p8), [#allocation4], %s4233_s30  ;;  %s4237_s27 = scalar_lea.vmem (!%p4969_p8), [#allocation3], %s2866_s18 }
 0x159   : > { %3739 = dma.done.wait (%p4132_p7), %s504_s12, 4096  }
 0x15a   : > { %3741 = vsyncadd (%p4132_p7), %s504_s12, 4294963200  ;;  %s512_s14 = sand.u32 1, %s3895_s28   ;;  %s4244_s5 = scalar_lea.vmem [#allocation6], %s2866_s18 }
 0x15b   : > { %s513_s11 = scalar_lea.sflag [#allocation7], %s512_s14 }
 0x15c   : > { %3743 = dma.done.wait (%p4132_p7), %s513_s11, 4096  }
 0x15d   : > { %3745 = vsyncadd (%p4132_p7), %s513_s11, 4294963200  ;;  %p4970_p11 = scmp.eq.s32.totalorder %s3895_s28, 0 }
 0x15f   : > { %3747 = dma.done.wait (%p4970_p11), [#allocation7], 2048   ;;  %p4971_p0 = pmov %p4970_p11 }
 0x161   : > { %3749 = vsyncadd (%p4971_p0), [#allocation7], 4294965248  ;;  %p4972_p12 = pmov %p4971_p0 }
 0x162   : > { %p4973_p13 = pmov %p4971_p0 }
 0x163   : > { %3751 = dma.done.wait (%p4972_p12), [#allocation10], 2080  }
 0x164   : > { %3753 = vsyncadd (%p4973_p13), [#allocation10], 4294965216  ;;  %p4974_p1 = pmov %p4971_p0 }
 0x165   : > { %p4975_p3 = pmov %p4971_p0 }
 0x166   : > { %3755 = dma.done.wait (%p4974_p1), [#allocation13], 8192  }
 0x167   : > { %3757 = vsyncadd (%p4975_p3), [#allocation13], 4294959104  ;;  %p4976_p7 = pmov %p4971_p0 }
 0x168   : > { %p4977_p2 = pmov %p4971_p0 }
 0x169   : > { %3759 = dma.done.wait (%p4976_p7), [#allocation16], 528  }
 0x16a   : > { %3761 = vsyncadd (%p4977_p2), [#allocation16], 4294966768  ;;  %p4978_p6 = pmov %p4971_p0 }
 0x16b   : > { %p4979_p10 = pmov %p4971_p0 }
 0x16c   : > { %3763 = dma.done.wait (%p4978_p6), [#allocation19], 528  }
 0x16d   : > { %3765 = vsyncadd (%p4979_p10), [#allocation19], 4294966768  ;;  %v3801_v1 = vmov 0.0   ;;  %v633_v2 = vld [vmem:[#allocation8 + $0x8] sm:$0xff]  ;;  %v635_v3 = vld [vmem:[#allocation8 + $0x18] sm:$0xff]  ;;  %vm660_vm0 = vcmask 523264  }
 0x16e   : > { %821 = vmatprep.mubr.f32.mxu0 %v3801_v1  ;;  %965 = vmatprep.mubr.f32.mxu1 %v3801_v1  ;;  %v632_v4 = vld [vmem:[#allocation8] sm:$0xff]  ;;  %v3078_v5 = vpack.c.bf16 %v635_v3, %v633_v2  ;;  %v634_v6 = vld [vmem:[#allocation8 + $0x10] sm:$0xff]  ;;  %v637_v7 = vld [vmem:[#allocation8 + $0x28] sm:$0xff]  ;;  %v3802_v37 = vmov 0.0|0.0   ;;  %vm2075_vm2 = vcmask 261120   ;;  %s2877_s20 = sshll.u32 %s4233_s30, 1 }
 0x16f   : > { %v639_v8 = vld [vmem:[#allocation8 + $0x38] sm:$0xff]  ;;  %v3080_v9 = vpack.c.bf16 %v634_v6, %v632_v4  ;;  %v636_v11 = vld [vmem:[#allocation8 + $0x20] sm:$0xff]  ;;  %v638_v12 = vld [vmem:[#allocation8 + $0x30] sm:$0xff]  ;;  %s2985_s7 = sshll.u32 %s3895_s28, 5  ;;  %s597_s3 = scalar_lea.vmem [#allocation21], %s2877_s20 }
 0x170   : > { %v3082_v10 = vpack.c.bf16 %v639_v8, %v637_v7  ;;  %v641_v13 = vld [vmem:[#allocation8 + $0x48] sm:$0xff]  ;;  %3079 = vmatprep.subr.bf16.mxu0 %v3078_v5  ;;  %3214 = vmatprep.subr.bf16.mxu1 %v3078_v5  ;;  %v643_v14 = vld [vmem:[#allocation8 + $0x58] sm:$0xff]  ;;  %v3084_v15 = vpack.c.bf16 %v638_v12, %v636_v11  ;;  %v640_v17 = vld [vmem:[#allocation8 + $0x40] sm:$0xff]  ;;  %s2669_s16 = sshll.u32 %s597_s3, 4  ;;  %s4980_s6 = sld [smem:[#allocation40_spill]]  ;;  %s4873_s16 = int_to_ptr.vmem [resolvable:$true] %s2669_s16 }
 0x171   : > { %3081 = vmatpush1.bf16.msra.mxu0 %v3080_v9  ;;  %3218 = vmatpush1.bf16.msra.mxu1 %v3080_v9  ;;  %v3086_v16 = vpack.c.bf16 %v643_v14, %v641_v13  ;;  %v642_v18 = vld [vmem:[#allocation8 + $0x50] sm:$0xff]  ;;  %v645_v19 = vld [vmem:[#allocation8 + $0x68] sm:$0xff]  ;;  %v647_v20 = vld [vmem:[#allocation8 + $0x78] sm:$0xff]  ;;  %s2655_s15 = scalar_lea.sflag [#allocation5], %s4233_s30  ;;  %s3694_s13 = scalar_lea.vmem %s4873_s16, 32 }
 0x172   : > { %3083 = vmatprep.subr.bf16.mxu0 %v3082_v10  ;;  %3215 = vmatprep.subr.bf16.mxu1 %v3082_v10  ;;  %v3088_v21 = vpack.c.bf16 %v642_v18, %v640_v17  ;;  %v3090_v22 = vpack.c.bf16 %v647_v20, %v645_v19  ;;  %v644_v23 = vld [vmem:[#allocation8 + $0x60] sm:$0xff]  ;;  %v646_v24 = vld [vmem:[#allocation8 + $0x70] sm:$0xff]  ;;  %v1047_v25 = vld [vmem:[#allocation9 + $0x8] sm:$0xff]  ;;  %p3695_p5 = scmp.ne.s32.totalorder %s4873_s16, %s3694_s13  ;;  %p4981_p9 = scmp.ne.s32.totalorder %s4961_s1, 0 }
 0x173   : > { %v1049_v26 = vld [vmem:[#allocation9 + $0x18] sm:$0xff]  ;;  %v3092_v27 = vpack.c.bf16 %v646_v24, %v644_v23  ;;  %v1046_v29 = vld [vmem:[#allocation9] sm:$0xff]  ;;  %v1048_v30 = vld [vmem:[#allocation9 + $0x10] sm:$0xff]  ;;  %s3805_s28 = smov [#allocation21]  }
 0x174   : > { %v3094_v28 = vpack.c.bf16 %v1049_v26, %v1047_v25  ;;  %v1051_v31 = vld [vmem:[#allocation9 + $0x28] sm:$0xff]  ;;  %v1053_v32 = vld [vmem:[#allocation9 + $0x38] sm:$0xff]  ;;  %v600_v33 = vld [vmem:[%s4237_s27] sm:$0xff]  ;;  %v3096_v35 = vpack.c.bf16 %v1048_v30, %v1046_v29  ;;  %p3696_p4 = pnand %p3695_p5, %p4981_p9  ;;  %s3698_s0 = sshll.u32 %s3805_s28, 4  ;;  %s3699_s0 = int_to_ptr.vmem [resolvable:$false] %s3698_s0 }
 0x175   : > { %3085 = vmatpush1.bf16.msra.mxu0 %v3084_v15  ;;  %3219 = vmatpush1.bf16.msra.mxu1 %v3084_v15  ;;  %v624_v34 = vld [vmem:[%s4237_s27 + $0xc0] sm:$0xff]  ;;  %v3098_v36 = vpack.c.bf16 %v1053_v32, %v1051_v31  ;;  %v1052_v39 = vld [vmem:[#allocation9 + $0x30] sm:$0xff]  ;;  %v1055_v40 = vld [vmem:[#allocation9 + $0x48] sm:$0xff]  ;;  %s3700_s8 = scalar_lea.vmem %s3699_s0, 64  ;;  %p3701_p11 = scmp.lt.s32.totalorder %s4873_s16, %s3699_s0 }
 0x176   : > { %3087 = vmatprep.subr.bf16.mxu0 %v3086_v16  ;;  %3216 = vmatprep.subr.bf16.mxu1 %v3086_v16  ;;  %v1050_v38 = vld [vmem:[#allocation9 + $0x20] sm:$0xff]  ;;  %v1057_v41 = vld [vmem:[#allocation9 + $0x58] sm:$0xff]  ;;  %v601_v42 = vld [vmem:[%s4237_s27 + $0x8] sm:$0xff]  ;;  %s4871_s19 = scalar_lea.hbm %s4980_s6, %s2985_s7  ;;  %p3697_p8 = pneg %p3696_p4 }
 0x177   : > { %v625_v43 = vld [vmem:[%s4237_s27 + $0xc8] sm:$0xff]  ;;  %v3100_v44 = vpack.c.bf16 %v1052_v39, %v1050_v38  ;;  %v3102_v45 = vpack.c.bf16 %v1057_v41, %v1055_v40  ;;  %v1054_v46 = vld [vmem:[#allocation9 + $0x40] sm:$0xff]  ;;  %v1056_v47 = vld [vmem:[#allocation9 + $0x50] sm:$0xff]  ;;  %p3702_p0 = scmp.lt.s32.totalorder %s3700_s8, %s3694_s13 }
 0x178   : > { %v1059_v48 = vld [vmem:[#allocation9 + $0x68] sm:$0xff]  ;;  %v1061_v49 = vld [vmem:[#allocation9 + $0x78] sm:$0xff]  ;;  %v602_v50 = vld [vmem:[%s4237_s27 + $0x10] sm:$0xff]  ;;  %v3104_v52 = vpack.c.bf16 %v1056_v47, %v1054_v46 }
 0x179   : > { %3089 = vmatpush1.bf16.msra.mxu0 %v3088_v21  ;;  %3220 = vmatpush1.bf16.msra.mxu1 %v3088_v21  ;;  %v626_v51 = vld [vmem:[%s4237_s27 + $0xd0] sm:$0xff]  ;;  %v3106_v53 = vpack.c.bf16 %v1061_v49, %v1059_v48  ;;  %v1058_v54 = vld [vmem:[#allocation9 + $0x60] sm:$0xff]  ;;  %v603_v56 = vld [vmem:[%s4237_s27 + $0x18] sm:$0xff]  ;;  %p3703_p12 = por %p3702_p0, %p3701_p11 }
 0x17a   : > { %3091 = vmatprep.subr.bf16.mxu0 %v3090_v22  ;;  %3217 = vmatprep.subr.bf16.mxu1 %v3090_v22  ;;  %v1060_v55 = vld [vmem:[#allocation9 + $0x70] sm:$0xff]  ;;  %v627_v57 = vld [vmem:[%s4237_s27 + $0xd8] sm:$0xff]  ;;  %v604_v59 = vld [vmem:[%s4237_s27 + $0x20] sm:$0xff] }
 0x17b   : > { %v3108_v58 = vpack.c.bf16 %v1060_v55, %v1058_v54  ;;  %v628_v60 = vld [vmem:[%s4237_s27 + $0xe0] sm:$0xff]  ;;  %v605_v61 = vld [vmem:[%s4237_s27 + $0x28] sm:$0xff]  ;;  %v606_v63 = vld [vmem:[%s4237_s27 + $0x30] sm:$0xff]  ;;  %p3704_p13 = pnand %p3703_p12, %p3697_p8 }
 0x17c   : > { %v629_v62 = vld [vmem:[%s4237_s27 + $0xe8] sm:$0xff]  ;;  %v630_v0 = vld [vmem:[%s4237_s27 + $0xf0] sm:$0xff]  ;;  %v607_v4 = vld [vmem:[%s4237_s27 + $0x38] sm:$0xff] }
 0x17d   : > { %3093 = vmatpush1.bf16.msra.mxu0 %v3092_v27  ;;  %3221 = vmatpush1.bf16.msra.mxu1 %v3092_v27  ;;  %v1447_v2 = vld [vmem:[#allocation14] sm:$0xff]  ;;  %v1448_v3 = vld [vmem:[#allocation14 + $0x8] sm:$0xff]  ;;  %v631_v5 = vld [vmem:[%s4237_s27 + $0xf8] sm:$0xff] }
 0x17e   : > { %3095 = vmatprep.subr.bf16.mxu1 %v3094_v28  ;;  %3110 = vmatprep.subr.bf16.mxu0 %v3802_v37  ;;  %v3111_v6 = vpack.c.bf16 %v1448_v3, %v1447_v2  ;;  %v1415_v7 = vld [vmem:[#allocation12] sm:$0xff]  ;;  %v1416_v8 = vld [vmem:[#allocation12 + $0x8] sm:$0xff]  ;;  %v1449_v10 = vld [vmem:[#allocation14 + $0x10] sm:$0xff] }
 0x17f   : > { %v608_v9 = vld [vmem:[%s4237_s27 + $0x40] sm:$0xff]  ;;  %v1452_v15 = vld [vmem:[#allocation14 + $0x28] sm:$0xff]  ;;  %v3159_v16 = vpack.c.bf16 %v1416_v8, %v1415_v7  ;;  %v1417_v17 = vld [vmem:[#allocation12 + $0x10] sm:$0xff] }
 0x180   : > { %2878 = vmatmul.mubr.msk.f32.vlgmr.msra.gmra.mrb[0].mxu0 %vm660_vm0, %v600_v33  ;;  %2902 = vmatmul.mubr.msk.f32.vlgmr.msra.gmra.mrb[0].mxu1 %vm660_vm0, %v624_v34  ;;  %v1450_v11 = vld [vmem:[#allocation14 + $0x18] sm:$0xff]  ;;  %v1451_v14 = vld [vmem:[#allocation14 + $0x20] sm:$0xff]  ;;  %v1453_v20 = vld [vmem:[#allocation14 + $0x30] sm:$0xff] }
 0x181   : > { %3097 = vmatpush1.bf16.msra.mxu1 %v3096_v35  ;;  %827 = vmatprep.mubr.f32.mxu0 %v3801_v1  ;;  %v1014_v12 = vld [vmem:[%s4244_s5] sm:$0xff]  ;;  %v3114_v13 = vpack.c.bf16 %v1450_v11, %v1449_v10  ;;  %v3117_v19 = vpack.c.bf16 %v1452_v15, %v1451_v14  ;;  %v609_v22 = vld [vmem:[%s4237_s27 + $0x48] sm:$0xff]  ;;  %v610_v30 = vld [vmem:[%s4237_s27 + $0x50] sm:$0xff] }
 0x182   : > { %971 = vmatprep.mubr.f32.mxu1 %v3801_v1  ;;  %3099 = vmatprep.subr.bf16.mxu1 %v3098_v36  ;;  %v1418_v18 = vld [vmem:[#allocation12 + $0x18] sm:$0xff]  ;;  %v1015_v23 = vld [vmem:[%s4244_s5 + $0x8] sm:$0xff]  ;;  %v1016_v31 = vld [vmem:[%s4244_s5 + $0x10] sm:$0xff] }
 0x183   : > { %3112 = vmatpush1.bf16.msra.mxu0 %v3111_v6  ;;  %v1454_v21 = vld [vmem:[#allocation14 + $0x38] sm:$0xff]  ;;  %v3162_v24 = vpack.c.bf16 %v1418_v18, %v1417_v17  ;;  %v1419_v25 = vld [vmem:[#allocation12 + $0x20] sm:$0xff]  ;;  %v1420_v26 = vld [vmem:[#allocation12 + $0x28] sm:$0xff] }
 0x184   : > { %2879 = vmatmul.mubr.msk.f32.gmra.mrb[2].mxu0 %vm660_vm0, %v601_v42  ;;  %2903 = vmatmul.mubr.msk.f32.gmra.mrb[2].mxu1 %vm660_vm0, %v625_v43  ;;  %v3120_v27 = vpack.c.bf16 %v1454_v21, %v1453_v20  ;;  %v1455_v28 = vld [vmem:[#allocation14 + $0x40] sm:$0xff]  ;;  %v1456_v29 = vld [vmem:[#allocation14 + $0x48] sm:$0xff]  ;;  %v3165_v32 = vpack.c.bf16 %v1420_v26, %v1419_v25  ;;  %v1421_v33 = vld [vmem:[#allocation12 + $0x30] sm:$0xff] }
 0x185   : > { %833 = vmatprep.mubr.f32.mxu0 %v3801_v1  ;;  %977 = vmatprep.mubr.f32.mxu1 %v3801_v1  ;;  %v1422_v34 = vld [vmem:[#allocation12 + $0x38] sm:$0xff]  ;;  %v3123_v35 = vpack.c.bf16 %v1456_v29, %v1455_v28  ;;  %v1457_v36 = vld [vmem:[#allocation14 + $0x50] sm:$0xff]  ;;  %v1423_v42 = vld [vmem:[#allocation12 + $0x40] sm:$0xff] }
 0x186   : > { %3101 = vmatpush1.bf16.msra.mxu1 %v3100_v44  ;;  %3113 = vmatprep.subr.bf16.mxu0 %v3802_v37  ;;  %v1458_v38 = vld [vmem:[#allocation14 + $0x58] sm:$0xff]  ;;  %v3168_v41 = vpack.c.bf16 %v1422_v34, %v1421_v33  ;;  %v1424_v43 = vld [vmem:[#allocation12 + $0x48] sm:$0xff]  ;;  %v1429_v3 = vld [vmem:[#allocation12 + $0x70] sm:$0xff] }
 0x187   : > { %3103 = vmatprep.subr.bf16.mxu1 %v3102_v45  ;;  %3115 = vmatpush1.bf16.msra.mxu0 %v3114_v13  ;;  %v611_v39 = vld [vmem:[%s4237_s27 + $0x58] sm:$0xff]  ;;  %v3126_v44 = vpack.c.bf16 %v1458_v38, %v1457_v36  ;;  %v1459_v45 = vld [vmem:[#allocation14 + $0x60] sm:$0xff]  ;;  %v1460_v46 = vld [vmem:[#allocation14 + $0x68] sm:$0xff]  ;;  %v3171_v49 = vpack.c.bf16 %v1424_v43, %v1423_v42 }
 0x188   : > { %2880 = vmatmul.mubr.msk.f32.gmra.mrb[4].mxu0 %vm660_vm0, %v602_v50  ;;  %2904 = vmatmul.mubr.msk.f32.gmra.mrb[4].mxu1 %vm660_vm0, %v626_v51  ;;  %v1017_v40 = vld [vmem:[%s4244_s5 + $0x18] sm:$0xff]  ;;  %v612_v47 = vld [vmem:[%s4237_s27 + $0x60] sm:$0xff]  ;;  %v613_v55 = vld [vmem:[%s4237_s27 + $0x68] sm:$0xff] }
 0x189   : > { %839 = vmatprep.mubr.f32.mxu0 %v3801_v1  ;;  %983 = vmatprep.mubr.f32.mxu1 %v3801_v1  ;;  %v1018_v48 = vld [vmem:[%s4244_s5 + $0x20] sm:$0xff]  ;;  %v1425_v50 = vld [vmem:[#allocation12 + $0x50] sm:$0xff]  ;;  %v1023_v20 = vld [vmem:[%s4244_s5 + $0x48] sm:$0xff] }
 0x18a   : > { %3105 = vmatpush1.bf16.msra.mxu1 %v3104_v52  ;;  %3116 = vmatprep.subr.bf16.mxu0 %v3802_v37  ;;  %v1426_v51 = vld [vmem:[#allocation12 + $0x58] sm:$0xff]  ;;  %v3129_v52 = vpack.c.bf16 %v1460_v46, %v1459_v45  ;;  %v1465_v6 = vld [vmem:[#allocation14 + $0x90] sm:$0xff]  ;;  %v1431_v11 = vld [vmem:[#allocation12 + $0x80] sm:$0xff] }
 0x18b   : > { %3107 = vmatprep.subr.bf16.mxu1 %v3106_v53  ;;  %3118 = vmatpush1.bf16.msra.mxu0 %v3117_v19  ;;  %v1461_v53 = vld [vmem:[#allocation14 + $0x70] sm:$0xff]  ;;  %v1462_v54 = vld [vmem:[#allocation14 + $0x78] sm:$0xff]  ;;  %v617_v19 = vld [vmem:[%s4237_s27 + $0x88] sm:$0xff] }
 0x18c   : > { %2881 = vmatmul.mubr.msk.f32.gmra.mrb[6].mxu0 %vm660_vm0, %v603_v56  ;;  %2905 = vmatmul.mubr.msk.f32.gmra.mrb[6].mxu1 %vm660_vm0, %v627_v57  ;;  %v1019_v56 = vld [vmem:[%s4244_s5 + $0x28] sm:$0xff]  ;;  %v3174_v57 = vpack.c.bf16 %v1426_v51, %v1425_v50  ;;  %v1466_v7 = vld [vmem:[#allocation14 + $0x98] sm:$0xff]  ;;  %v1433_v17 = vld [vmem:[#allocation12 + $0x90] sm:$0xff] }
 0x18d   : > { %845 = vmatprep.mubr.f32.mxu0 %v3801_v1  ;;  %989 = vmatprep.mubr.f32.mxu1 %v3801_v1  ;;  %v615_v8 = vld [vmem:[%s4237_s27 + $0x78] sm:$0xff]  ;;  %v3138_v13 = vpack.c.bf16 %v1466_v7, %v1465_v6  ;;  %v616_v14 = vld [vmem:[%s4237_s27 + $0x80] sm:$0xff]  ;;  %v1024_v25 = vld [vmem:[%s4244_s5 + $0x50] sm:$0xff] }
 0x18e   : > { %3109 = vmatpush1.bf16.msra.mxu1 %v3108_v58  ;;  %3119 = vmatprep.subr.bf16.mxu0 %v3802_v37  ;;  %v1427_v58 = vld [vmem:[#allocation12 + $0x60] sm:$0xff]  ;;  %v1434_v18 = vld [vmem:[#allocation12 + $0x98] sm:$0xff]  ;;  %v1440_v33 = vld [vmem:[#allocation12 + $0xc8] sm:$0xff] }
 0x18f   : > { %3158 = vmatprep.subr.bf16.mxu1 %v3802_v37  ;;  %3121 = vmatpush1.bf16.msra.mxu0 %v3120_v27  ;;  %v1022_v15 = vld [vmem:[%s4244_s5 + $0x40] sm:$0xff]  ;;  %v3186_v21 = vpack.c.bf16 %v1434_v18, %v1433_v17  ;;  %v1437_v27 = vld [vmem:[#allocation12 + $0xb0] sm:$0xff] }
 0x190   : > { %2882 = vmatmul.mubr.msk.f32.gmra.mrb[8].mxu0 %vm660_vm0, %v604_v59  ;;  %2906 = vmatmul.mubr.msk.f32.gmra.mrb[8].mxu1 %vm660_vm0, %v628_v60  ;;  %v1428_v59 = vld [vmem:[#allocation12 + $0x68] sm:$0xff]  ;;  %v3132_v60 = vpack.c.bf16 %v1462_v54, %v1461_v53  ;;  %v1438_v28 = vld [vmem:[#allocation12 + $0xb8] sm:$0xff]  ;;  %v1441_v38 = vld [vmem:[#allocation12 + $0xd0] sm:$0xff] }
 0x191   : > { %851 = vmatprep.mubr.f32.mxu0 %v3801_v1  ;;  %995 = vmatprep.mubr.f32.mxu1 %v3801_v1  ;;  %v3177_v2 = vpack.c.bf16 %v1428_v59, %v1427_v58  ;;  %v619_v29 = vld [vmem:[%s4237_s27 + $0x98] sm:$0xff]  ;;  %v620_v34 = vld [vmem:[%s4237_s27 + $0xa0] sm:$0xff]  ;;  %v622_v45 = vld [vmem:[%s4237_s27 + $0xb0] sm:$0xff] }
 0x192   : > { %3122 = vmatprep.subr.bf16.mxu0 %v3802_v37  ;;  %v1443_v43 = vld [vmem:[#allocation12 + $0xe0] sm:$0xff]  ;;  %v1028_v46 = vld [vmem:[%s4244_s5 + $0x70] sm:$0xff]  ;;  %v623_v53 = vld [vmem:[%s4237_s27 + $0xb8] sm:$0xff] }
 0x193   : > { %3124 = vmatpush1.bf16.msra.mxu0 %v3123_v35  ;;  %v1026_v35 = vld [vmem:[%s4244_s5 + $0x60] sm:$0xff]  ;;  %v1445_v51 = vld [vmem:[#allocation12 + $0xf0] sm:$0xff] }
 0x194   : > { %2883 = vmatmul.mubr.msk.f32.gmra.mrb[10].mxu0 %vm660_vm0, %v605_v61  ;;  %2907 = vmatmul.mubr.msk.f32.gmra.mrb[10].mxu1 %vm660_vm0, %v629_v62  ;;  %v1463_v61 = vld [vmem:[#allocation14 + $0x80] sm:$0xff]  ;;  %v1464_v62 = vld [vmem:[#allocation14 + $0x88] sm:$0xff]  ;;  %v1029_v54 = vld [vmem:[%s4244_s5 + $0x78] sm:$0xff] }
 0x195   : > { %857 = vmatprep.mubr.f32.mxu0 %v3801_v1  ;;  %1001 = vmatprep.mubr.f32.mxu1 %v3801_v1  ;;  %v1030_v58 = vld [vmem:[%s4244_s5 + $0x80] sm:$0xff]  ;;  %v1040_v17 = vld [vmem:[%s4244_s5 + $0xd0] sm:$0xff]  ;;  %v1041_v18 = vld [vmem:[%s4244_s5 + $0xd8] sm:$0xff] }
 0x196   : > { %3125 = vmatprep.subr.bf16.mxu0 %v3802_v37  ;;  %v1034_v6 = vld [vmem:[%s4244_s5 + $0xa0] sm:$0xff] }
 0x197   : > { %3127 = vmatpush1.bf16.msra.mxu0 %v3126_v44  ;;  %v1444_v44 = vld [vmem:[#allocation12 + $0xe8] sm:$0xff]  ;;  %v1475_v7 = vld [vmem:[#allocation14 + $0xe0] sm:$0xff] }
 0x198   : > { %2884 = vmatmul.mubr.msk.f32.gmra.mrb[12].mxu0 %vm660_vm0, %v606_v63  ;;  %2908 = vmatmul.mubr.msk.f32.gmra.mrb[12].mxu1 %vm660_vm0, %v630_v0  ;;  %v614_v63 = vld [vmem:[%s4237_s27 + $0x70] sm:$0xff] }
 0x199   : > { %863 = vmatprep.mubr.f32.mxu0 %v3801_v1  ;;  %1007 = vmatprep.mubr.f32.mxu1 %v3801_v1  ;;  %v1020_v0 = vld [vmem:[%s4244_s5 + $0x30] sm:$0xff] }
 0x19a   : > { %3128 = vmatprep.subr.bf16.mxu0 %v3802_v37 }
 0x19b   : > { %3130 = vmatpush1.bf16.msra.mxu0 %v3129_v52  ;;  %v1446_v52 = vld [vmem:[#allocation12 + $0xf8] sm:$0xff] }
 0x19c   : > { %2885 = vmatmul.mubr.msk.f32.gmra.mrb[14].mxu0 %vm660_vm0, %v607_v4  ;;  %2909 = vmatmul.mubr.msk.f32.gmra.mrb[14].mxu1 %vm660_vm0, %v631_v5  ;;  %v1430_v4 = vld [vmem:[#allocation12 + $0x78] sm:$0xff]  ;;  %v3135_v5 = vpack.c.bf16 %v1464_v62, %v1463_v61  ;;  %v1471_v61 = vld [vmem:[#allocation14 + $0xc0] sm:$0xff]  ;;  %v1472_v62 = vld [vmem:[#allocation14 + $0xc8] sm:$0xff] }
 0x19d   : > { %869 = vmatprep.mubr.f32.mxu0 %v3801_v1  ;;  %1222 = vmatprep.mubr.f32.mxu1 %v3801_v1  ;;  %v3180_v10 = vpack.c.bf16 %v1430_v4, %v1429_v3  ;;  %v1474_v3 = vld [vmem:[#allocation14 + $0xd8] sm:$0xff] }
 0x19e   : > { %3131 = vmatprep.subr.bf16.mxu0 %v3802_v37  ;;  %v1033_v4 = vld [vmem:[%s4244_s5 + $0x98] sm:$0xff] }
 0x19f   : > { %3133 = vmatpush1.bf16.msra.mxu0 %v3132_v60  ;;  %v1031_v60 = vld [vmem:[%s4244_s5 + $0x88] sm:$0xff] }
 0x1a0   : > { %2886 = vmatmul.mubr.msk.f32.gmra.mrb[16].mxu0 %vm660_vm0, %v608_v9  ;;  %2910 = vmatmul.mubr.msk.f32.vlgmr.msra.gmra.mrb[16].mxu1 %vm660_vm0, %v1014_v12  ;;  %v1021_v9 = vld [vmem:[%s4244_s5 + $0x38] sm:$0xff]  ;;  %v1432_v12 = vld [vmem:[#allocation12 + $0x88] sm:$0xff] }
 0x1a1   : > { %875 = vmatprep.mubr.f32.mxu0 %v3801_v1  ;;  %1228 = vmatprep.mubr.f32.mxu1 %v3801_v1 }
 0x1a2   : > { %3160 = vmatpush1.bf16.msra.mxu1 %v3159_v16  ;;  %3134 = vmatprep.subr.bf16.mxu0 %v3802_v37  ;;  %v3183_v16 = vpack.c.bf16 %v1432_v12, %v1431_v11  ;;  %v1477_v11 = vld [vmem:[#allocation14 + $0xf0] sm:$0xff]  ;;  %v1478_v12 = vld [vmem:[#allocation14 + $0xf8] sm:$0xff] }
 0x1a3   : > { %3161 = vmatprep.subr.bf16.mxu1 %v3802_v37  ;;  %3136 = vmatpush1.bf16.msra.mxu0 %v3135_v5 }
 0x1a4   : > { %2887 = vmatmul.mubr.msk.f32.gmra.mrb[18].mxu0 %vm660_vm0, %v609_v22  ;;  %2911 = vmatmul.mubr.msk.f32.gmra.mrb[18].mxu1 %vm660_vm0, %v1015_v23  ;;  %v1435_v22 = vld [vmem:[#allocation12 + $0xa0] sm:$0xff]  ;;  %v1436_v23 = vld [vmem:[#allocation12 + $0xa8] sm:$0xff] }
 0x1a5   : > { %881 = vmatprep.mubr.f32.mxu0 %v3801_v1  ;;  %1234 = vmatprep.mubr.f32.mxu1 %v3801_v1  ;;  %v3189_v26 = vpack.c.bf16 %v1436_v23, %v1435_v22  ;;  %v1045_v22 = vld [vmem:[%s4244_s5 + $0xf8] sm:$0xff]  ;;  %v650_v23 = vlaneseq }
 0x1a6   : > { %3163 = vmatpush1.bf16.msra.mxu1 %v3162_v24  ;;  %3137 = vmatprep.subr.bf16.mxu0 %v3802_v37  ;;  %v618_v24 = vld [vmem:[%s4237_s27 + $0x90] sm:$0xff] }
 0x1a7   : > { %3164 = vmatprep.subr.bf16.mxu1 %v3802_v37  ;;  %3139 = vmatpush1.bf16.msra.mxu0 %v3138_v13  ;;  %v3156_v13 = vpack.c.bf16 %v1478_v12, %v1477_v11 }
 0x1a8   : > { %2888 = vmatmul.mubr.msk.f32.gmra.mrb[20].mxu0 %vm660_vm0, %v610_v30  ;;  %2912 = vmatmul.mubr.msk.f32.gmra.mrb[20].mxu1 %vm660_vm0, %v1016_v31  ;;  %v1025_v30 = vld [vmem:[%s4244_s5 + $0x58] sm:$0xff]  ;;  %v3192_v31 = vpack.c.bf16 %v1438_v28, %v1437_v27 }
 0x1a9   : > { %887 = vmatprep.mubr.f32.mxu0 %v3801_v1  ;;  %1240 = vmatprep.mubr.f32.mxu1 %v3801_v1 }
 0x1aa   : > { %3166 = vmatpush1.bf16.msra.mxu1 %v3165_v32  ;;  %3140 = vmatprep.subr.bf16.mxu0 %v3802_v37  ;;  %v1439_v32 = vld [vmem:[#allocation12 + $0xc0] sm:$0xff] }
 0x1ab   : > { %3167 = vmatprep.subr.bf16.mxu1 %v3802_v37  ;;  %v3195_v36 = vpack.c.bf16 %v1440_v33, %v1439_v32 }
 0x1ac   : > { %2889 = vmatmul.mubr.msk.f32.gmra.mrb[22].mxu0 %vm660_vm0, %v611_v39  ;;  %2913 = vmatmul.mubr.msk.f32.gmra.mrb[22].mxu1 %vm660_vm0, %v1017_v40  ;;  %v1442_v39 = vld [vmem:[#allocation12 + $0xd8] sm:$0xff]  ;;  %v621_v40 = vld [vmem:[%s4237_s27 + $0xa8] sm:$0xff] }
 0x1ad   : > { %893 = vmatprep.mubr.f32.mxu0 %v3801_v1  ;;  %1246 = vmatprep.mubr.f32.mxu1 %v3801_v1  ;;  %v3198_v42 = vpack.c.bf16 %v1442_v39, %v1441_v38 }
 0x1ae   : > { %3169 = vmatpush1.bf16.msra.mxu1 %v3168_v41  ;;  %v1027_v41 = vld [vmem:[%s4244_s5 + $0x68] sm:$0xff] }
 0x1af   : > { %3170 = vmatprep.subr.bf16.mxu1 %v3802_v37 }
 0x1b0   : > { %2890 = vmatmul.mubr.msk.f32.gmra.mrb[24].mxu0 %vm660_vm0, %v612_v47  ;;  %2914 = vmatmul.mubr.msk.f32.gmra.mrb[24].mxu1 %vm660_vm0, %v1018_v48  ;;  %v1467_v47 = vld [vmem:[#allocation14 + $0xa0] sm:$0xff]  ;;  %v1468_v48 = vld [vmem:[#allocation14 + $0xa8] sm:$0xff] }
 0x1b1   : > { %899 = vmatprep.mubr.f32.mxu0 %v3801_v1  ;;  %1252 = vmatprep.mubr.f32.mxu1 %v3801_v1  ;;  %v3141_v50 = vpack.c.bf16 %v1468_v48, %v1467_v47 }
 0x1b2   : > { %3172 = vmatpush1.bf16.msra.mxu1 %v3171_v49  ;;  %v3201_v49 = vpack.c.bf16 %v1444_v44, %v1443_v43 }
 0x1b3   : > { %3173 = vmatprep.subr.bf16.mxu1 %v3802_v37  ;;  %3142 = vmatpush1.bf16.msra.mxu0 %v3141_v50 }
 0x1b4   : > { %2891 = vmatmul.mubr.msk.f32.gmra.mrb[26].mxu0 %vm660_vm0, %v613_v55  ;;  %2915 = vmatmul.mubr.msk.f32.gmra.mrb[26].mxu1 %vm660_vm0, %v1019_v56  ;;  %v3204_v55 = vpack.c.bf16 %v1446_v52, %v1445_v51  ;;  %v1469_v56 = vld [vmem:[#allocation14 + $0xb0] sm:$0xff] }
 0x1b5   : > { %905 = vmatprep.mubr.f32.mxu0 %v3801_v1  ;;  %1258 = vmatprep.mubr.f32.mxu1 %v3801_v1 }
 0x1b6   : > { %3175 = vmatpush1.bf16.msra.mxu1 %v3174_v57  ;;  %3143 = vmatprep.subr.bf16.mxu0 %v3802_v37  ;;  %v1470_v57 = vld [vmem:[#allocation14 + $0xb8] sm:$0xff] }
 0x1b7   : > { %3176 = vmatprep.subr.bf16.mxu1 %v3802_v37  ;;  %v3144_v59 = vpack.c.bf16 %v1470_v57, %v1469_v56 }
 0x1b8   : > { %2892 = vmatmul.mubr.msk.f32.gmra.mrb[28].mxu0 %vm660_vm0, %v614_v63  ;;  %2916 = vmatmul.mubr.msk.f32.gmra.mrb[28].mxu1 %vm660_vm0, %v1020_v0  ;;  %v3147_v63 = vpack.c.bf16 %v1472_v62, %v1471_v61  ;;  %v1032_v0 = vld [vmem:[%s4244_s5 + $0x90] sm:$0xff] }
 0x1b9   : > { %911 = vmatprep.mubr.f32.mxu0 %v3801_v1  ;;  %1264 = vmatprep.mubr.f32.mxu1 %v3801_v1 }
 0x1ba   : > { %3178 = vmatpush1.bf16.msra.mxu1 %v3177_v2  ;;  %3145 = vmatpush1.bf16.msra.mxu0 %v3144_v59  ;;  %v1473_v2 = vld [vmem:[#allocation14 + $0xd0] sm:$0xff] }
 0x1bb   : > { %3179 = vmatprep.subr.bf16.mxu1 %v3802_v37  ;;  %3146 = vmatprep.subr.bf16.mxu0 %v3802_v37  ;;  %v3150_v5 = vpack.c.bf16 %v1474_v3, %v1473_v2 }
 0x1bc   : > { %2893 = vmatmul.mubr.msk.f32.gmra.mrb[30].mxu0 %vm660_vm0, %v615_v8  ;;  %2917 = vmatmul.mubr.msk.f32.gmra.mrb[30].mxu1 %vm660_vm0, %v1021_v9  ;;  %v1476_v8 = vld [vmem:[#allocation14 + $0xe8] sm:$0xff] }
 0x1bd   : > { %917 = vmatprep.mubr.f32.mxu0 %v3801_v1  ;;  %1270 = vmatprep.mubr.f32.mxu1 %v3801_v1  ;;  %v3153_v9 = vpack.c.bf16 %v1476_v8, %v1475_v7 }
 0x1be   : > { %3181 = vmatpush1.bf16.msra.mxu1 %v3180_v10  ;;  %3148 = vmatpush1.bf16.msra.mxu0 %v3147_v63  ;;  %v1035_v10 = vld [vmem:[%s4244_s5 + $0xa8] sm:$0xff] }
 0x1bf   : > { %3182 = vmatprep.subr.bf16.mxu1 %v3802_v37  ;;  %3149 = vmatprep.subr.bf16.mxu0 %v3802_v37 }
 0x1c0   : > { %2894 = vmatmul.mubr.msk.f32.gmra.mrb[32].mxu0 %vm660_vm0, %v616_v14  ;;  %2918 = vmatmul.mubr.msk.f32.gmra.mrb[32].mxu1 %vm660_vm0, %v1022_v15  ;;  %v1036_v14 = vld [vmem:[%s4244_s5 + $0xb0] sm:$0xff]  ;;  %v1037_v15 = vld [vmem:[%s4244_s5 + $0xb8] sm:$0xff] }
 0x1c1   : > { %923 = vmatprep.mubr.f32.mxu0 %v3801_v1  ;;  %1276 = vmatprep.mubr.f32.mxu1 %v3801_v1 }
 0x1c2   : > { %3184 = vmatpush1.bf16.msra.mxu1 %v3183_v16  ;;  %3151 = vmatpush1.bf16.msra.mxu0 %v3150_v5  ;;  %v1039_v16 = vld [vmem:[%s4244_s5 + $0xc8] sm:$0xff] }
 0x1c3   : > { %3185 = vmatprep.subr.bf16.mxu1 %v3802_v37  ;;  %3152 = vmatprep.subr.bf16.mxu0 %v3802_v37 }
 0x1c4   : > { %2895 = vmatmul.mubr.msk.f32.gmra.mrb[34].mxu0 %vm660_vm0, %v617_v19  ;;  %2919 = vmatmul.mubr.msk.f32.gmra.mrb[34].mxu1 %vm660_vm0, %v1023_v20  ;;  %v1042_v19 = vld [vmem:[%s4244_s5 + $0xe0] sm:$0xff]  ;;  %v1043_v20 = vld [vmem:[%s4244_s5 + $0xe8] sm:$0xff] }
 0x1c5   : > { %929 = vmatprep.mubr.f32.mxu0 %v3801_v1  ;;  %1282 = vmatprep.mubr.f32.mxu1 %v3801_v1 }
 0x1c6   : > { %3187 = vmatpush1.bf16.msra.mxu1 %v3186_v21  ;;  %3154 = vmatpush1.bf16.msra.mxu0 %v3153_v9  ;;  %v1044_v21 = vld [vmem:[%s4244_s5 + $0xf0] sm:$0xff] }
 0x1c7   : > { %3188 = vmatprep.subr.bf16.mxu1 %v3802_v37  ;;  %3155 = vmatprep.subr.bf16.mxu0 %v3802_v37 }
 0x1c8   : > { %2896 = vmatmul.mubr.msk.f32.gmra.mrb[36].mxu0 %vm660_vm0, %v618_v24  ;;  %2920 = vmatmul.mubr.msk.f32.gmra.mrb[36].mxu1 %vm660_vm0, %v1024_v25  ;;  %v4495_v24 = vshrl.u32 %v650_v23, 7 }
 0x1c9   : > { %935 = vmatprep.mubr.f32.mxu0 %v3801_v1  ;;  %1288 = vmatprep.mubr.f32.mxu1 %v3801_v1 }
 0x1ca   : > { %3190 = vmatpush1.bf16.msra.mxu1 %v3189_v26  ;;  %3157 = vmatpush1.bf16.msra.mxu0 %v3156_v13  ;;  %v656_v25 = vsub.s32 1, %v4495_v24  ;;  %v648_v26 = vld [vmem:[#allocation11] sm:$0x3]  ;;  %v652_v27 = vsub.s32 0, %v4495_v24 }
 0x1cb   : > { %3191 = vmatprep.subr.bf16.mxu1 %v3802_v37 }
 0x1cc   : > { %2897 = vmatmul.mubr.msk.f32.gmra.mrb[38].mxu0 %vm660_vm0, %v619_v29  ;;  %2921 = vmatmul.mubr.msk.f32.gmra.mrb[38].mxu1 %vm660_vm0, %v1025_v30  ;;  %v4499_v28 = vrot.slane %v648_v26, %v656_v25  ;;  %v4503_v29 = vrot.slane %v648_v26, %v652_v27 }
 0x1cd   : > { %941 = vmatprep.mubr.f32.mxu0 %v3801_v1  ;;  %1294 = vmatprep.mubr.f32.mxu1 %v3801_v1 }
 0x1ce   : > { %3193 = vmatpush1.bf16.msra.mxu1 %v3192_v31 }
 0x1cf   : > { %3194 = vmatprep.subr.bf16.mxu1 %v3802_v37 }
 0x1d0   : > { %2898 = vmatmul.mubr.msk.f32.gmra.mrb[40].mxu0 %vm660_vm0, %v620_v34  ;;  %2922 = vmatmul.mubr.msk.f32.gmra.mrb[40].mxu1 %vm660_vm0, %v1026_v35 }
 0x1d1   : > { %947 = vmatprep.mubr.f32.mxu0 %v3801_v1  ;;  %1300 = vmatprep.mubr.f32.mxu1 %v3801_v1 }
 0x1d2   : > { %3196 = vmatpush1.bf16.msra.mxu1 %v3195_v36 }
 0x1d3   : > { %3197 = vmatprep.subr.bf16.mxu1 %v3802_v37 }
 0x1d4   : > { %2899 = vmatmul.mubr.msk.f32.gmra.mrb[42].mxu0 %vm660_vm0, %v621_v40  ;;  %2923 = vmatmul.mubr.msk.f32.gmra.mrb[42].mxu1 %vm660_vm0, %v1027_v41 }
 0x1d5   : > { %953 = vmatprep.mubr.f32.mxu0 %v3801_v1  ;;  %1306 = vmatprep.mubr.f32.mxu1 %v3801_v1 }
 0x1d6   : > { %3199 = vmatpush1.bf16.msra.mxu1 %v3198_v42 }
 0x1d7   : > { %3200 = vmatprep.subr.bf16.mxu1 %v3802_v37 }
 0x1d8   : > { %2900 = vmatmul.mubr.msk.f32.gmra.mrb[44].mxu0 %vm660_vm0, %v622_v45  ;;  %2924 = vmatmul.mubr.msk.f32.gmra.mrb[44].mxu1 %vm660_vm0, %v1028_v46 }
 0x1d9   : > { %959 = vmatprep.mubr.f32.mxu0 %v3801_v1  ;;  %1312 = vmatprep.mubr.f32.mxu1 %v3801_v1 }
 0x1da   : > { %3202 = vmatpush1.bf16.msra.mxu1 %v3201_v49 }
 0x1db   : > { %3203 = vmatprep.subr.bf16.mxu1 %v3802_v37  ;;  %v1038_v37 = vld [vmem:[%s4244_s5 + $0xc0] sm:$0xff] }
 0x1dc   : > { %2901 = vmatmul.mubr.msk.f32.gmra.mrb[46].mxu0 %vm660_vm0, %v623_v53  ;;  %2925 = vmatmul.mubr.msk.f32.gmra.mrb[46].mxu1 %vm660_vm0, %v1029_v54 }
 0x1dd   : > { %1318 = vmatprep.mubr.f32.mxu1 %v3801_v1 }
 0x1de   : > { %3205 = vmatpush1.bf16.msra.mxu1 %v3204_v55 }
 0x1e0   : > { %2926 = vmatmul.mubr.msk.f32.gmra.mrb[48].mxu1 %vm660_vm0, %v1030_v58 }
 0x1e1   : > { %1324 = vmatprep.mubr.f32.mxu1 %v3801_v1 }
 0x1e4   : > { %2927 = vmatmul.mubr.msk.f32.gmra.mrb[50].mxu1 %vm660_vm0, %v1031_v60 }
 0x1e5   : > { %1330 = vmatprep.mubr.f32.mxu1 %v3801_v1 }
 0x1e8   : > { %2928 = vmatmul.mubr.msk.f32.gmra.mrb[52].mxu1 %vm660_vm0, %v1032_v0 }
 0x1e9   : > { %1336 = vmatprep.mubr.f32.mxu1 %v3801_v1 }
 0x1ec   : > { %2929 = vmatmul.mubr.msk.f32.gmra.mrb[54].mxu1 %vm660_vm0, %v1033_v4 }
 0x1ed   : > { %1342 = vmatprep.mubr.f32.mxu1 %v3801_v1 }
 0x1f0   : > { %2930 = vmatmul.mubr.msk.f32.gmra.mrb[56].mxu1 %vm660_vm0, %v1034_v6 }
 0x1f1   : > { %1348 = vmatprep.mubr.f32.mxu1 %v3801_v1 }
 0x1f4   : > { %2931 = vmatmul.mubr.msk.f32.gmra.mrb[58].mxu1 %vm660_vm0, %v1035_v10 }
 0x1f5   : > { %1354 = vmatprep.mubr.f32.mxu1 %v3801_v1 }
 0x1f8   : > { %2932 = vmatmul.mubr.msk.f32.gmra.mrb[60].mxu1 %vm660_vm0, %v1036_v14 }
 0x1f9   : > { %1360 = vmatprep.mubr.f32.mxu1 %v3801_v1 }
 0x1fc   : > { %2933 = vmatmul.mubr.msk.f32.gmra.mrb[62].mxu1 %vm660_vm0, %v1037_v15 }
 0x1fd   : > { %1366 = vmatprep.mubr.f32.mxu1 %v3801_v1 }
 0x200   : > { %2934 = vmatmul.mubr.msk.f32.gmra.mrb[64].mxu1 %vm660_vm0, %v1038_v37 }
 0x201   : > { %1372 = vmatprep.mubr.f32.mxu1 %v3801_v1 }
 0x204   : > { %2935 = vmatmul.mubr.msk.f32.gmra.mrb[66].mxu1 %vm660_vm0, %v1039_v16 }
 0x205   : > { %1378 = vmatprep.mubr.f32.mxu1 %v3801_v1 }
 0x208   : > { %2936 = vmatmul.mubr.msk.f32.gmra.mrb[68].mxu1 %vm660_vm0, %v1040_v17 }
 0x209   : > { %1384 = vmatprep.mubr.f32.mxu1 %v3801_v1 }
 0x20c   : > { %2937 = vmatmul.mubr.msk.f32.gmra.mrb[70].mxu1 %vm660_vm0, %v1041_v18 }
 0x20d   : > { %1390 = vmatprep.mubr.f32.mxu1 %v3801_v1 }
 0x210   : > { %2938 = vmatmul.mubr.msk.f32.gmra.mrb[72].mxu1 %vm660_vm0, %v1042_v19  ;;  %v2064_v19 = vld [vmem:[#allocation17] sm:$0xff] }
 0x211   : > { %1396 = vmatprep.mubr.f32.mxu1 %v3801_v1 }
 0x214   : > { %2939 = vmatmul.mubr.msk.f32.gmra.mrb[74].mxu1 %vm660_vm0, %v1043_v20  ;;  %v2065_v20 = vld [vmem:[#allocation17 + $0x8] sm:$0xff] }
 0x215   : > { %1402 = vmatprep.mubr.f32.mxu1 %v3801_v1  ;;  %v3206_v25 = vpack.c.bf16 %v2065_v20, %v2064_v19 }
 0x217   : > { %3207 = vmatprep.subr.bf16.mxu0 %v3206_v25 }
 0x218   : > { %2940 = vmatmul.mubr.msk.f32.gmra.mrb[76].mxu1 %vm660_vm0, %v1044_v21 }
 0x219   : > { %1408 = vmatprep.mubr.f32.mxu1 %v3801_v1 }
 0x21c   : > { %2941 = vmatmul.mubr.msk.f32.gmra.mrb[78].mxu1 %vm660_vm0, %v1045_v22 }
 0x253   : > { %v823_v30 = vpop.f32.mrb[0].mxu0  ;;  %v4505_v1 = vpop.f32.mrb[0].mxu1 }
 0x254   : > { %v824_v31 = vadd.f32 %v823_v30, %v4503_v29  ;;  %v825_v32 = vpop.f32.mrb[1].mxu0  ;;  %v4508_v33 = vpop.f32.mrb[1].mxu1  ;;  %v2066_v30 = vld [vmem:[#allocation17 + $0x10] sm:$0xff] }
 0x255   : > { %v826_v34 = vadd.f32 %v825_v32, %v4499_v28 }
 0x257   : > { %v829_v35 = vpop.f32.mrb[2].mxu0  ;;  %v4511_v36 = vpop.f32.mrb[2].mxu1  ;;  %1768 = vmatprep.mubr.f32.mxu1 %v826_v34 }
 0x258   : > { %v830_v38 = vadd.f32 %v829_v35, %v4503_v29  ;;  %v831_v39 = vpop.f32.mrb[3].mxu0  ;;  %v4514_v40 = vpop.f32.mrb[3].mxu1  ;;  %1769 = vmatmul.mubr.f32.vlgmr.msra.gmra.mrb[80].mxu1 %v824_v31  ;;  %v2067_v31 = vld [vmem:[#allocation17 + $0x18] sm:$0xff] }
 0x259   : > { %v832_v41 = vadd.f32 %v831_v39, %v4499_v28 }
 0x25b   : > { %v835_v42 = vpop.f32.mrb[4].mxu0  ;;  %v4517_v43 = vpop.f32.mrb[4].mxu1  ;;  %1773 = vmatprep.mubr.f32.mxu1 %v832_v41 }
 0x25c   : > { %v836_v44 = vadd.f32 %v835_v42, %v4503_v29  ;;  %v837_v45 = vpop.f32.mrb[5].mxu0  ;;  %v4520_v46 = vpop.f32.mrb[5].mxu1  ;;  %1774 = vmatmul.mubr.f32.gmra.mrb[82].mxu1 %v830_v38 }
 0x25d   : > { %v838_v47 = vadd.f32 %v837_v45, %v4499_v28 }
 0x25f   : > { %v841_v48 = vpop.f32.mrb[6].mxu0  ;;  %v4523_v49 = vpop.f32.mrb[6].mxu1  ;;  %1778 = vmatprep.mubr.f32.mxu1 %v838_v47 }
 0x260   : > { %v842_v50 = vadd.f32 %v841_v48, %v4503_v29  ;;  %v843_v51 = vpop.f32.mrb[7].mxu0  ;;  %v4526_v52 = vpop.f32.mrb[7].mxu1  ;;  %1779 = vmatmul.mubr.f32.gmra.mrb[84].mxu1 %v836_v44  ;;  %v3210_v44 = vpack.c.bf16 %v2067_v31, %v2066_v30 }
 0x261   : > { %v844_v53 = vadd.f32 %v843_v51, %v4499_v28 }
 0x263   : > { %v847_v54 = vpop.f32.mrb[8].mxu0  ;;  %v4529_v55 = vpop.f32.mrb[8].mxu1  ;;  %1783 = vmatprep.mubr.f32.mxu1 %v844_v53 }
 0x264   : > { %v848_v56 = vadd.f32 %v847_v54, %v4503_v29  ;;  %v849_v57 = vpop.f32.mrb[9].mxu0  ;;  %v4532_v58 = vpop.f32.mrb[9].mxu1  ;;  %1784 = vmatmul.mubr.f32.gmra.mrb[86].mxu1 %v842_v50 }
 0x265   : > { %v850_v59 = vadd.f32 %v849_v57, %v4499_v28 }
 0x267   : > { %v853_v60 = vpop.f32.mrb[10].mxu0  ;;  %v4535_v61 = vpop.f32.mrb[10].mxu1  ;;  %1788 = vmatprep.mubr.f32.mxu1 %v850_v59 }
 0x268   : > { %v854_v62 = vadd.f32 %v853_v60, %v4503_v29  ;;  %v855_v63 = vpop.f32.mrb[11].mxu0  ;;  %v4538_v0 = vpop.f32.mrb[11].mxu1  ;;  %1789 = vmatmul.mubr.f32.gmra.mrb[88].mxu1 %v848_v56 }
 0x269   : > { %v856_v2 = vadd.f32 %v855_v63, %v4499_v28 }
 0x26b   : > { %v859_v3 = vpop.f32.mrb[12].mxu0  ;;  %v4541_v4 = vpop.f32.mrb[12].mxu1  ;;  %1793 = vmatprep.mubr.f32.mxu1 %v856_v2 }
 0x26c   : > { %v860_v5 = vadd.f32 %v859_v3, %v4503_v29  ;;  %v861_v6 = vpop.f32.mrb[13].mxu0  ;;  %v4544_v7 = vpop.f32.mrb[13].mxu1  ;;  %1794 = vmatmul.mubr.f32.gmra.mrb[90].mxu1 %v854_v62 }
 0x26d   : > { %v862_v8 = vadd.f32 %v861_v6, %v4499_v28 }
 0x26f   : > { %v865_v9 = vpop.f32.mrb[14].mxu0  ;;  %v4547_v10 = vpop.f32.mrb[14].mxu1  ;;  %1798 = vmatprep.mubr.f32.mxu1 %v862_v8 }
 0x270   : > { %v866_v11 = vadd.f32 %v865_v9, %v4503_v29  ;;  %v867_v12 = vpop.f32.mrb[15].mxu0  ;;  %v4550_v13 = vpop.f32.mrb[15].mxu1  ;;  %1799 = vmatmul.mubr.f32.gmra.mrb[92].mxu1 %v860_v5 }
 0x271   : > { %v868_v14 = vadd.f32 %v867_v12, %v4499_v28 }
 0x273   : > { %v871_v15 = vpop.f32.mrb[16].mxu0  ;;  %v1224_v37 = vpop.f32.mrb[16].mxu1  ;;  %1803 = vmatprep.mubr.f32.mxu1 %v868_v14 }
 0x274   : > { %v872_v16 = vadd.f32 %v871_v15, %v4503_v29  ;;  %v873_v17 = vpop.f32.mrb[17].mxu0  ;;  %v1226_v18 = vpop.f32.mrb[17].mxu1  ;;  %1804 = vmatmul.mubr.f32.gmra.mrb[94].mxu1 %v866_v11  ;;  %v1225_v26 = vadd.f32 %v1224_v37, %v4503_v29 }
 0x275   : > { %v874_v21 = vadd.f32 %v873_v17, %v4499_v28  ;;  %v1227_v22 = vadd.f32 %v1226_v18, %v4499_v28 }
 0x277   : > { %v877_v32 = vpop.f32.mrb[18].mxu0  ;;  %v1230_v34 = vpop.f32.mrb[18].mxu1  ;;  %1543 = vmatprep.mubr.f32.mxu0 %v1227_v22  ;;  %1808 = vmatprep.mubr.f32.mxu1 %v874_v21 }
 0x278   : > { %v878_v35 = vadd.f32 %v877_v32, %v4503_v29  ;;  %v879_v38 = vpop.f32.mrb[19].mxu0  ;;  %v1232_v39 = vpop.f32.mrb[19].mxu1  ;;  %1544 = vmatmul.mubr.f32.vlgmr.msra.gmra.mrb[48].mxu0 %v1225_v26  ;;  %1809 = vmatmul.mubr.f32.gmra.mrb[96].mxu1 %v872_v16  ;;  %v1231_v45 = vadd.f32 %v1230_v34, %v4503_v29 }
 0x279   : > { %v880_v41 = vadd.f32 %v879_v38, %v4499_v28  ;;  %v1233_v42 = vadd.f32 %v1232_v39, %v4499_v28  ;;  %3209 = vmatpush3.bf16.msra.mxu0 %v3206_v25 }
 0x27a   : > { %3211 = vmatprep.subr.bf16.mxu0 %v3210_v44 }
 0x27b   : > { %v883_v47 = vpop.f32.mrb[20].mxu0  ;;  %v1236_v48 = vpop.f32.mrb[20].mxu1  ;;  %1548 = vmatprep.mubr.f32.mxu0 %v1233_v42  ;;  %1813 = vmatprep.mubr.f32.mxu1 %v880_v41 }
 0x27c   : > { %v884_v50 = vadd.f32 %v883_v47, %v4503_v29  ;;  %v885_v51 = vpop.f32.mrb[21].mxu0  ;;  %v1238_v53 = vpop.f32.mrb[21].mxu1  ;;  %1549 = vmatmul.mubr.f32.gmra.mrb[50].mxu0 %v1231_v45  ;;  %1814 = vmatmul.mubr.f32.gmra.mrb[98].mxu1 %v878_v35  ;;  %v1237_v57 = vadd.f32 %v1236_v48, %v4503_v29 }
 0x27d   : > { %v886_v54 = vadd.f32 %v885_v51, %v4499_v28  ;;  %v1239_v56 = vadd.f32 %v1238_v53, %v4499_v28  ;;  %3213 = vmatpush3.bf16.msra.mxu0 %v3210_v44 }
 0x27f   : > { %v889_v59 = vpop.f32.mrb[22].mxu0  ;;  %v1242_v60 = vpop.f32.mrb[22].mxu1  ;;  %1553 = vmatprep.mubr.f32.mxu0 %v1239_v56  ;;  %1818 = vmatprep.mubr.f32.mxu1 %v886_v54 }
 0x280   : > { %v890_v62 = vadd.f32 %v889_v59, %v4503_v29  ;;  %v891_v63 = vpop.f32.mrb[23].mxu0  ;;  %v1244_v2 = vpop.f32.mrb[23].mxu1  ;;  %1554 = vmatmul.mubr.f32.gmra.mrb[52].mxu0 %v1237_v57  ;;  %1819 = vmatmul.mubr.f32.gmra.mrb[100].mxu1 %v884_v50  ;;  %v1243_v6 = vadd.f32 %v1242_v60, %v4503_v29 }
 0x281   : > { %v892_v3 = vadd.f32 %v891_v63, %v4499_v28  ;;  %v1245_v5 = vadd.f32 %v1244_v2, %v4499_v28 }
 0x283   : > { %v895_v8 = vpop.f32.mrb[24].mxu0  ;;  %v1248_v9 = vpop.f32.mrb[24].mxu1  ;;  %1558 = vmatprep.mubr.f32.mxu0 %v1245_v5  ;;  %1823 = vmatprep.mubr.f32.mxu1 %v892_v3 }
 0x284   : > { %v896_v11 = vadd.f32 %v895_v8, %v4503_v29  ;;  %v897_v12 = vpop.f32.mrb[25].mxu0  ;;  %v1250_v14 = vpop.f32.mrb[25].mxu1  ;;  %1559 = vmatmul.mubr.f32.gmra.mrb[54].mxu0 %v1243_v6  ;;  %1824 = vmatmul.mubr.f32.gmra.mrb[102].mxu1 %v890_v62  ;;  %v1249_v16 = vadd.f32 %v1248_v9, %v4503_v29 }
 0x285   : > { %v898_v15 = vadd.f32 %v897_v12, %v4499_v28  ;;  %v1251_v37 = vadd.f32 %v1250_v14, %v4499_v28 }
 0x287   : > { %v901_v17 = vpop.f32.mrb[26].mxu0  ;;  %v1254_v18 = vpop.f32.mrb[26].mxu1  ;;  %1563 = vmatprep.mubr.f32.mxu0 %v1251_v37  ;;  %1828 = vmatprep.mubr.f32.mxu1 %v898_v15 }
 0x288   : > { %v902_v19 = vadd.f32 %v901_v17, %v4503_v29  ;;  %v903_v20 = vpop.f32.mrb[27].mxu0  ;;  %v1256_v21 = vpop.f32.mrb[27].mxu1  ;;  %1564 = vmatmul.mubr.f32.gmra.mrb[56].mxu0 %v1249_v16  ;;  %1829 = vmatmul.mubr.f32.gmra.mrb[104].mxu1 %v896_v11  ;;  %v1255_v26 = vadd.f32 %v1254_v18, %v4503_v29 }
 0x289   : > { %v904_v22 = vadd.f32 %v903_v20, %v4499_v28  ;;  %v1257_v25 = vadd.f32 %v1256_v21, %v4499_v28 }
 0x28b   : > { %v907_v30 = vpop.f32.mrb[28].mxu0  ;;  %v1260_v31 = vpop.f32.mrb[28].mxu1  ;;  %1568 = vmatprep.mubr.f32.mxu0 %v1257_v25  ;;  %1833 = vmatprep.mubr.f32.mxu1 %v904_v22 }
 0x28c   : > { %v908_v32 = vadd.f32 %v907_v30, %v4503_v29  ;;  %v909_v34 = vpop.f32.mrb[29].mxu0  ;;  %v1262_v35 = vpop.f32.mrb[29].mxu1  ;;  %1569 = vmatmul.mubr.f32.gmra.mrb[58].mxu0 %v1255_v26  ;;  %1834 = vmatmul.mubr.f32.gmra.mrb[106].mxu1 %v902_v19  ;;  %v1261_v41 = vadd.f32 %v1260_v31, %v4503_v29 }
 0x28d   : > { %v910_v38 = vadd.f32 %v909_v34, %v4499_v28  ;;  %v1263_v39 = vadd.f32 %v1262_v35, %v4499_v28 }
 0x28f   : > { %v913_v42 = vpop.f32.mrb[30].mxu0  ;;  %v1266_v44 = vpop.f32.mrb[30].mxu1  ;;  %1573 = vmatprep.mubr.f32.mxu0 %v1263_v39  ;;  %1838 = vmatprep.mubr.f32.mxu1 %v910_v38 }
 0x290   : > { %v914_v45 = vadd.f32 %v913_v42, %v4503_v29  ;;  %v915_v47 = vpop.f32.mrb[31].mxu0  ;;  %v1268_v48 = vpop.f32.mrb[31].mxu1  ;;  %1574 = vmatmul.mubr.f32.gmra.mrb[60].mxu0 %v1261_v41  ;;  %1839 = vmatmul.mubr.f32.gmra.mrb[108].mxu1 %v908_v32  ;;  %v1267_v53 = vadd.f32 %v1266_v44, %v4503_v29 }
 0x291   : > { %v916_v50 = vadd.f32 %v915_v47, %v4499_v28  ;;  %v1269_v51 = vadd.f32 %v1268_v48, %v4499_v28 }
 0x293   : > { %v919_v54 = vpop.f32.mrb[32].mxu0  ;;  %v1272_v56 = vpop.f32.mrb[32].mxu1  ;;  %1578 = vmatprep.mubr.f32.mxu0 %v1269_v51  ;;  %1843 = vmatprep.mubr.f32.mxu1 %v916_v50 }
 0x294   : > { %v920_v57 = vadd.f32 %v919_v54, %v4503_v29  ;;  %v921_v59 = vpop.f32.mrb[33].mxu0  ;;  %v1274_v60 = vpop.f32.mrb[33].mxu1  ;;  %1579 = vmatmul.mubr.f32.gmra.mrb[62].mxu0 %v1267_v53  ;;  %1844 = vmatmul.mubr.f32.gmra.mrb[110].mxu1 %v914_v45  ;;  %v1273_v2 = vadd.f32 %v1272_v56, %v4503_v29 }
 0x295   : > { %v922_v62 = vadd.f32 %v921_v59, %v4499_v28  ;;  %v1275_v63 = vadd.f32 %v1274_v60, %v4499_v28 }
 0x297   : > { %v925_v3 = vpop.f32.mrb[34].mxu0  ;;  %v1278_v5 = vpop.f32.mrb[34].mxu1  ;;  %1583 = vmatprep.mubr.f32.mxu0 %v1275_v63  ;;  %1848 = vmatprep.mubr.f32.mxu1 %v922_v62 }
 0x298   : > { %v926_v6 = vadd.f32 %v925_v3, %v4503_v29  ;;  %v927_v8 = vpop.f32.mrb[35].mxu0  ;;  %v1280_v9 = vpop.f32.mrb[35].mxu1  ;;  %1584 = vmatmul.mubr.f32.gmra.mrb[64].mxu0 %v1273_v2  ;;  %1849 = vmatmul.mubr.f32.gmra.mrb[112].mxu1 %v920_v57  ;;  %v1279_v14 = vadd.f32 %v1278_v5, %v4503_v29 }
 0x299   : > { %v928_v11 = vadd.f32 %v927_v8, %v4499_v28  ;;  %v1281_v12 = vadd.f32 %v1280_v9, %v4499_v28 }
 0x29b   : > { %v931_v15 = vpop.f32.mrb[36].mxu0  ;;  %v1284_v37 = vpop.f32.mrb[36].mxu1  ;;  %1588 = vmatprep.mubr.f32.mxu0 %v1281_v12  ;;  %1853 = vmatprep.mubr.f32.mxu1 %v928_v11 }
 0x29c   : > { %v932_v16 = vadd.f32 %v931_v15, %v4503_v29  ;;  %v933_v17 = vpop.f32.mrb[37].mxu0  ;;  %v1286_v18 = vpop.f32.mrb[37].mxu1  ;;  %1589 = vmatmul.mubr.f32.gmra.mrb[66].mxu0 %v1279_v14  ;;  %1854 = vmatmul.mubr.f32.gmra.mrb[114].mxu1 %v926_v6  ;;  %v1285_v21 = vadd.f32 %v1284_v37, %v4503_v29 }
 0x29d   : > { %v934_v19 = vadd.f32 %v933_v17, %v4499_v28  ;;  %v1287_v20 = vadd.f32 %v1286_v18, %v4499_v28 }
 0x29f   : > { %v937_v22 = vpop.f32.mrb[38].mxu0  ;;  %v1290_v25 = vpop.f32.mrb[38].mxu1  ;;  %1593 = vmatprep.mubr.f32.mxu0 %v1287_v20  ;;  %1858 = vmatprep.mubr.f32.mxu1 %v934_v19  ;;  %v970_v19 = vadd.f32 %v4508_v33, %v4499_v28 }
 0x2a0   : > { %v938_v26 = vadd.f32 %v937_v22, %v4503_v29  ;;  %v939_v30 = vpop.f32.mrb[39].mxu0  ;;  %v1292_v31 = vpop.f32.mrb[39].mxu1  ;;  %1594 = vmatmul.mubr.f32.gmra.mrb[68].mxu0 %v1285_v21  ;;  %1859 = vmatmul.mubr.f32.gmra.mrb[116].mxu1 %v932_v16  ;;  %v1291_v35 = vadd.f32 %v1290_v25, %v4503_v29  ;;  %v968_v25 = vadd.f32 %v4505_v1, %v4503_v29 }
 0x2a1   : > { %v940_v32 = vadd.f32 %v939_v30, %v4499_v28  ;;  %v1293_v34 = vadd.f32 %v1292_v31, %v4499_v28  ;;  %v976_v30 = vadd.f32 %v4514_v40, %v4499_v28  ;;  %v982_v1 = vadd.f32 %v4520_v46, %v4499_v28 }
 0x2a3   : > { %v943_v38 = vpop.f32.mrb[40].mxu0  ;;  %v1296_v39 = vpop.f32.mrb[40].mxu1  ;;  %1598 = vmatprep.mubr.f32.mxu0 %v1293_v34  ;;  %1863 = vmatprep.mubr.f32.mxu1 %v940_v32  ;;  %v974_v34 = vadd.f32 %v4511_v36, %v4503_v29  ;;  %v988_v36 = vadd.f32 %v4526_v52, %v4499_v28 }
 0x2a4   : > { %v944_v41 = vadd.f32 %v943_v38, %v4503_v29  ;;  %v945_v42 = vpop.f32.mrb[41].mxu0  ;;  %v1298_v44 = vpop.f32.mrb[41].mxu1  ;;  %1599 = vmatmul.mubr.f32.gmra.mrb[70].mxu0 %v1291_v35  ;;  %1864 = vmatmul.mubr.f32.gmra.mrb[118].mxu1 %v938_v26  ;;  %v1297_v48 = vadd.f32 %v1296_v39, %v4503_v29 }
 0x2a5   : > { %v946_v45 = vadd.f32 %v945_v42, %v4499_v28  ;;  %v1299_v47 = vadd.f32 %v1298_v44, %v4499_v28 }
 0x2a7   : > { %v949_v50 = vpop.f32.mrb[42].mxu0  ;;  %v1302_v51 = vpop.f32.mrb[42].mxu1  ;;  %1603 = vmatprep.mubr.f32.mxu0 %v1299_v47  ;;  %1868 = vmatprep.mubr.f32.mxu1 %v946_v45  ;;  %v986_v47 = vadd.f32 %v4523_v49, %v4503_v29  ;;  %v1000_v49 = vadd.f32 %v4538_v0, %v4499_v28 }
 0x2a8   : > { %v950_v53 = vadd.f32 %v949_v50, %v4503_v29  ;;  %v951_v54 = vpop.f32.mrb[43].mxu0  ;;  %v1304_v56 = vpop.f32.mrb[43].mxu1  ;;  %1604 = vmatmul.mubr.f32.gmra.mrb[72].mxu0 %v1297_v48  ;;  %1869 = vmatmul.mubr.f32.gmra.mrb[120].mxu1 %v944_v41  ;;  %v1303_v60 = vadd.f32 %v1302_v51, %v4503_v29  ;;  %v980_v41 = vadd.f32 %v4517_v43, %v4503_v29 }
 0x2a9   : > { %v952_v57 = vadd.f32 %v951_v54, %v4499_v28  ;;  %v1305_v59 = vadd.f32 %v1304_v56, %v4499_v28  ;;  %v994_v43 = vadd.f32 %v4532_v58, %v4499_v28 }
 0x2ab   : > { %v955_v62 = vpop.f32.mrb[44].mxu0  ;;  %v1308_v63 = vpop.f32.mrb[44].mxu1  ;;  %1608 = vmatprep.mubr.f32.mxu0 %v1305_v59  ;;  %1873 = vmatprep.mubr.f32.mxu1 %v952_v57  ;;  %v998_v59 = vadd.f32 %v4535_v61, %v4503_v29  ;;  %v1012_v61 = vadd.f32 %v4550_v13, %v4499_v28 }
 0x2ac   : > { %v956_v2 = vadd.f32 %v955_v62, %v4503_v29  ;;  %v957_v3 = vpop.f32.mrb[45].mxu0  ;;  %v1310_v5 = vpop.f32.mrb[45].mxu1  ;;  %1609 = vmatmul.mubr.f32.gmra.mrb[74].mxu0 %v1303_v60  ;;  %1874 = vmatmul.mubr.f32.gmra.mrb[122].mxu1 %v950_v53  ;;  %v1309_v9 = vadd.f32 %v1308_v63, %v4503_v29  ;;  %v992_v53 = vadd.f32 %v4529_v55, %v4503_v29 }
 0x2ad   : > { %v958_v6 = vadd.f32 %v957_v3, %v4499_v28  ;;  %v1311_v8 = vadd.f32 %v1310_v5, %v4499_v28  ;;  %v1006_v55 = vadd.f32 %v4544_v7, %v4499_v28 }
 0x2af   : > { %v961_v11 = vpop.f32.mrb[46].mxu0  ;;  %v1314_v12 = vpop.f32.mrb[46].mxu1  ;;  %1613 = vmatprep.mubr.f32.mxu0 %v1311_v8  ;;  %1878 = vmatprep.mubr.f32.mxu1 %v958_v6  ;;  %v1010_v8 = vadd.f32 %v4547_v10, %v4503_v29 }
 0x2b0   : > { %v962_v14 = vadd.f32 %v961_v11, %v4503_v29  ;;  %v963_v15 = vpop.f32.mrb[47].mxu0  ;;  %v1316_v37 = vpop.f32.mrb[47].mxu1  ;;  %1614 = vmatmul.mubr.f32.gmra.mrb[76].mxu0 %v1309_v9  ;;  %1879 = vmatmul.mubr.f32.gmra.mrb[124].mxu1 %v956_v2  ;;  %v1315_v18 = vadd.f32 %v1314_v12, %v4503_v29  ;;  %v1004_v2 = vadd.f32 %v4541_v4, %v4503_v29 }
 0x2b1   : > { %v964_v16 = vadd.f32 %v963_v15, %v4499_v28  ;;  %v1317_v17 = vadd.f32 %v1316_v37, %v4499_v28 }
 0x2b3   : > { %v1320_v20 = vpop.f32.mrb[48].mxu1  ;;  %1618 = vmatprep.mubr.f32.mxu0 %v1317_v17  ;;  %1883 = vmatprep.mubr.f32.mxu1 %v964_v16 }
 0x2b4   : > { %v1322_v21 = vpop.f32.mrb[49].mxu1  ;;  %1619 = vmatmul.mubr.f32.gmra.mrb[78].mxu0 %v1315_v18  ;;  %1884 = vmatmul.mubr.f32.gmra.mrb[126].mxu1 %v962_v14  ;;  %v1321_v26 = vadd.f32 %v1320_v20, %v4503_v29 }
 0x2b5   : > { %v1323_v22 = vadd.f32 %v1322_v21, %v4499_v28  ;;  %1888 = vmatprep.mubr.f32.mxu1 %v970_v19 }
 0x2b7   : > { %v1326_v31 = vpop.f32.mrb[50].mxu1  ;;  %1623 = vmatprep.mubr.f32.mxu0 %v1323_v22 }
 0x2b8   : > { %v1328_v33 = vpop.f32.mrb[51].mxu1  ;;  %1624 = vmatmul.mubr.f32.gmra.mrb[80].mxu0 %v1321_v26  ;;  %1889 = vmatmul.mubr.f32.gmra.mrb[128].mxu1 %v968_v25  ;;  %v1327_v35 = vadd.f32 %v1326_v31, %v4503_v29 }
 0x2b9   : > { %v1329_v32 = vadd.f32 %v1328_v33, %v4499_v28  ;;  %1893 = vmatprep.mubr.f32.mxu1 %v976_v30 }
 0x2bb   : > { %v1332_v38 = vpop.f32.mrb[52].mxu1  ;;  %1628 = vmatprep.mubr.f32.mxu0 %v1329_v32 }
 0x2bc   : > { %v1334_v39 = vpop.f32.mrb[53].mxu1  ;;  %1629 = vmatmul.mubr.f32.gmra.mrb[82].mxu0 %v1327_v35  ;;  %1894 = vmatmul.mubr.f32.gmra.mrb[130].mxu1 %v974_v34  ;;  %v1333_v42 = vadd.f32 %v1332_v38, %v4503_v29 }
 0x2bd   : > { %v1335_v40 = vadd.f32 %v1334_v39, %v4499_v28  ;;  %1898 = vmatprep.mubr.f32.mxu1 %v982_v1 }
 0x2bf   : > { %v1338_v44 = vpop.f32.mrb[54].mxu1  ;;  %1633 = vmatprep.mubr.f32.mxu0 %v1335_v40 }
 0x2c0   : > { %v1340_v45 = vpop.f32.mrb[55].mxu1  ;;  %1634 = vmatmul.mubr.f32.gmra.mrb[84].mxu0 %v1333_v42  ;;  %1899 = vmatmul.mubr.f32.gmra.mrb[132].mxu1 %v980_v41  ;;  %v1339_v48 = vadd.f32 %v1338_v44, %v4503_v29 }
 0x2c1   : > { %v1341_v46 = vadd.f32 %v1340_v45, %v4499_v28  ;;  %1903 = vmatprep.mubr.f32.mxu1 %v988_v36 }
 0x2c3   : > { %v1344_v50 = vpop.f32.mrb[56].mxu1  ;;  %1638 = vmatprep.mubr.f32.mxu0 %v1341_v46 }
 0x2c4   : > { %v1346_v51 = vpop.f32.mrb[57].mxu1  ;;  %1639 = vmatmul.mubr.f32.gmra.mrb[86].mxu0 %v1339_v48  ;;  %1904 = vmatmul.mubr.f32.gmra.mrb[134].mxu1 %v986_v47  ;;  %v1345_v54 = vadd.f32 %v1344_v50, %v4503_v29 }
 0x2c5   : > { %v1347_v52 = vadd.f32 %v1346_v51, %v4499_v28  ;;  %1908 = vmatprep.mubr.f32.mxu1 %v994_v43 }
 0x2c7   : > { %v1350_v56 = vpop.f32.mrb[58].mxu1  ;;  %1643 = vmatprep.mubr.f32.mxu0 %v1347_v52 }
 0x2c8   : > { %v1352_v57 = vpop.f32.mrb[59].mxu1  ;;  %1644 = vmatmul.mubr.f32.gmra.mrb[88].mxu0 %v1345_v54  ;;  %1909 = vmatmul.mubr.f32.gmra.mrb[136].mxu1 %v992_v53  ;;  %v1351_v60 = vadd.f32 %v1350_v56, %v4503_v29 }
 0x2c9   : > { %v1353_v58 = vadd.f32 %v1352_v57, %v4499_v28  ;;  %1913 = vmatprep.mubr.f32.mxu1 %v1000_v49 }
 0x2cb   : > { %v1356_v62 = vpop.f32.mrb[60].mxu1  ;;  %1648 = vmatprep.mubr.f32.mxu0 %v1353_v58 }
 0x2cc   : > { %v1358_v63 = vpop.f32.mrb[61].mxu1  ;;  %1649 = vmatmul.mubr.f32.gmra.mrb[90].mxu0 %v1351_v60  ;;  %1914 = vmatmul.mubr.f32.gmra.mrb[138].mxu1 %v998_v59  ;;  %v1357_v3 = vadd.f32 %v1356_v62, %v4503_v29 }
 0x2cd   : > { %v1359_v0 = vadd.f32 %v1358_v63, %v4499_v28  ;;  %1918 = vmatprep.mubr.f32.mxu1 %v1006_v55  ;;  %v4687_v55 = vld [vmem:[#allocation15] ss:$0 sm:$0xff] }
 0x2cf   : > { %v1362_v5 = vpop.f32.mrb[62].mxu1  ;;  %1653 = vmatprep.mubr.f32.mxu0 %v1359_v0 }
 0x2d0   : > { %v1364_v6 = vpop.f32.mrb[63].mxu1  ;;  %1654 = vmatmul.mubr.f32.gmra.mrb[92].mxu0 %v1357_v3  ;;  %1919 = vmatmul.mubr.f32.gmra.mrb[140].mxu1 %v1004_v2  ;;  %v1363_v9 = vadd.f32 %v1362_v5, %v4503_v29 }
 0x2d1   : > { %v1365_v7 = vadd.f32 %v1364_v6, %v4499_v28  ;;  %1923 = vmatprep.mubr.f32.mxu1 %v1012_v61  ;;  %v2559_v6 = vld [vmem:[#allocation20 + $0x10] sm:$0xff] }
 0x2d3   : > { %v1368_v11 = vpop.f32.mrb[64].mxu1  ;;  %1658 = vmatprep.mubr.f32.mxu0 %v1365_v7 }
 0x2d4   : > { %v1370_v4 = vpop.f32.mrb[65].mxu1  ;;  %1659 = vmatmul.mubr.f32.gmra.mrb[94].mxu0 %v1363_v9  ;;  %1924 = vmatmul.mubr.f32.gmra.mrb[142].mxu1 %v1010_v8  ;;  %v1369_v12 = vadd.f32 %v1368_v11, %v4503_v29 }
 0x2d5   : > { %v1371_v13 = vadd.f32 %v1370_v4, %v4499_v28  ;;  %v3803_v4 = vmov 0  }
 0x2d6   : > { %3373 = vset.pattern.permute.xlu1 %v3803_v4  ;;  %3372 = vset.pattern.permute.xlu0 %v3803_v4 }
 0x2d7   : > { %v1374_v14 = vpop.f32.mrb[66].mxu1  ;;  %1663 = vmatprep.mubr.f32.mxu0 %v1371_v13  ;;  %2573 = vperm.xlu1 %3373, %v2559_v6  }
 0x2d8   : > { %v1376_v15 = vpop.f32.mrb[67].mxu1  ;;  %1664 = vmatmul.mubr.f32.gmra.mrb[96].mxu0 %v1369_v12  ;;  %v1375_v16 = vadd.f32 %v1374_v14, %v4503_v29  ;;  %v2560_v14 = vld [vmem:[#allocation20 + $0x18] sm:$0xff] }
 0x2d9   : > { %v1377_v37 = vadd.f32 %v1376_v15, %v4499_v28 }
 0x2db   : > { %v1380_v10 = vpop.f32.mrb[68].mxu1  ;;  %1668 = vmatprep.mubr.f32.mxu0 %v1377_v37  ;;  %2578 = vperm.xlu1 %3373, %v2560_v14  }
 0x2dc   : > { %v1382_v17 = vpop.f32.mrb[69].mxu1  ;;  %1669 = vmatmul.mubr.f32.gmra.mrb[98].mxu0 %v1375_v16  ;;  %v1381_v19 = vadd.f32 %v1380_v10, %v4503_v29 }
 0x2dd   : > { %v1383_v18 = vadd.f32 %v1382_v17, %v4499_v28 }
 0x2df   : > { %v1386_v20 = vpop.f32.mrb[70].mxu1  ;;  %1673 = vmatprep.mubr.f32.mxu0 %v1383_v18 }
 0x2e0   : > { %v1388_v21 = vpop.f32.mrb[71].mxu1  ;;  %1674 = vmatmul.mubr.f32.gmra.mrb[100].mxu0 %v1381_v19  ;;  %v1387_v25 = vadd.f32 %v1386_v20, %v4503_v29 }
 0x2e1   : > { %v1389_v22 = vadd.f32 %v1388_v21, %v4499_v28 }
 0x2e3   : > { %v1392_v26 = vpop.f32.mrb[72].mxu1  ;;  %1678 = vmatprep.mubr.f32.mxu0 %v1389_v22 }
 0x2e4   : > { %v1394_v30 = vpop.f32.mrb[73].mxu1  ;;  %1679 = vmatmul.mubr.f32.gmra.mrb[102].mxu0 %v1387_v25  ;;  %v1393_v33 = vadd.f32 %v1392_v26, %v4503_v29 }
 0x2e5   : > { %v1395_v31 = vadd.f32 %v1394_v30, %v4499_v28 }
 0x2e7   : > { %v1398_v32 = vpop.f32.mrb[74].mxu1  ;;  %1683 = vmatprep.mubr.f32.mxu0 %v1395_v31 }
 0x2e8   : > { %v1400_v34 = vpop.f32.mrb[75].mxu1  ;;  %1684 = vmatmul.mubr.f32.gmra.mrb[104].mxu0 %v1393_v33  ;;  %v1399_v1 = vadd.f32 %v1398_v32, %v4503_v29 }
 0x2e9   : > { %v1401_v35 = vadd.f32 %v1400_v34, %v4499_v28 }
 0x2eb   : > { %v1404_v38 = vpop.f32.mrb[76].mxu1  ;;  %1688 = vmatprep.mubr.f32.mxu0 %v1401_v35 }
 0x2ec   : > { %v1406_v39 = vpop.f32.mrb[77].mxu1  ;;  %1689 = vmatmul.mubr.f32.gmra.mrb[106].mxu0 %v1399_v1  ;;  %v1405_v41 = vadd.f32 %v1404_v38, %v4503_v29 }
 0x2ed   : > { %v1407_v40 = vadd.f32 %v1406_v39, %v4499_v28 }
 0x2ef   : > { %v1410_v42 = vpop.f32.mrb[78].mxu1  ;;  %1693 = vmatprep.mubr.f32.mxu0 %v1407_v40 }
 0x2f0   : > { %v1412_v36 = vpop.f32.mrb[79].mxu1  ;;  %1694 = vmatmul.mubr.f32.gmra.mrb[108].mxu0 %v1405_v41  ;;  %v1411_v45 = vadd.f32 %v1410_v42, %v4503_v29 }
 0x2f1   : > { %v1413_v44 = vadd.f32 %v1412_v36, %v4499_v28 }
 0x2f3   : > { %1698 = vmatprep.mubr.f32.mxu0 %v1413_v44 }
 0x2f4   : > { %1699 = vmatmul.mubr.f32.gmra.mrb[110].mxu0 %v1411_v45 }
 0x32b   : > { %v1770_v46 = vpop.f32.mrb[80].mxu1 }
 0x32c   : > { %v1772_v47 = vpop.f32.mrb[81].mxu1 }
 0x32f   : > { %v1775_v48 = vpop.f32.mrb[82].mxu1 }
 0x330   : > { %v1777_v43 = vpop.f32.mrb[83].mxu1 }
 0x333   : > { %v1780_v50 = vpop.f32.mrb[84].mxu1 }
 0x334   : > { %v1782_v51 = vpop.f32.mrb[85].mxu1 }
 0x337   : > { %v1785_v52 = vpop.f32.mrb[86].mxu1 }
 0x338   : > { %v1787_v53 = vpop.f32.mrb[87].mxu1 }
 0x33b   : > { %v1790_v54 = vpop.f32.mrb[88].mxu1 }
 0x33c   : > { %v1792_v49 = vpop.f32.mrb[89].mxu1 }
 0x33f   : > { %v4681_v56 = vpop.f32.mrb[90].mxu1 }
 0x340   : > { %v1797_v57 = vpop.f32.mrb[91].mxu1 }
 0x343   : > { %v4683_v58 = vpop.f32.mrb[92].mxu1 }
 0x344   : > { %v1802_v28 = vpop.f32.mrb[93].mxu1 }
 0x347   : > { %v4685_v59 = vpop.f32.mrb[94].mxu1 }
 0x348   : > { %v1807_v29 = vpop.f32.mrb[95].mxu1 }
 0x34b   : > { %v1545_v60 = vpop.f32.mrb[48].mxu0  ;;  %v4689_v62 = vpop.f32.mrb[96].mxu1 }
 0x34c   : > { %v1771_v63 = vadd.f32 %v1770_v46, %v1545_v60  ;;  %v1547_v0 = vpop.f32.mrb[49].mxu0  ;;  %v1812_v2 = vpop.f32.mrb[97].mxu1 }
 0x34e   : > { %v1936_v3 = vadd.f32 %v4687_v55, %v1771_v63 }
 0x34f   : > { %v1550_v61 = vpop.f32.mrb[50].mxu0  ;;  %v4692_v5 = vpop.f32.mrb[98].mxu1 }
 0x350   : > { %v2000_v7 = vmul.f32 0.01, %v1936_v3  ;;  %v1776_v8 = vadd.f32 %v1775_v48, %v1550_v61  ;;  %v1552_v9 = vpop.f32.mrb[51].mxu0  ;;  %vm1968_vm1 = vcmp.gt.f32.partialorder %v1936_v3, 0.0  ;;  %v1817_v11 = vpop.f32.mrb[99].mxu1 }
 0x352   : > { %v1937_v13 = vadd.f32 %v4687_v55, %v1776_v8  ;;  %v2032_v12 = vsel %vm1968_vm1, %v1936_v3, %v2000_v7 }
 0x353   : > { %v1555_v15 = vpop.f32.mrb[52].mxu0  ;;  %3030 = vmatprep.mubr.msk.f32.mxu0 %vm2075_vm2, %v2032_v12  ;;  %v4696_v37 = vpop.f32.mrb[100].mxu1 }
 0x354   : > { %vm1969_vm3 = vcmp.gt.f32.partialorder %v1937_v13, 0.0  ;;  %v2001_v16 = vmul.f32 0.01, %v1937_v13  ;;  %v1781_v10 = vadd.f32 %v1780_v50, %v1555_v15  ;;  %v1557_v17 = vpop.f32.mrb[53].mxu0  ;;  %v1822_v18 = vpop.f32.mrb[101].mxu1 }
 0x356   : > { %v2033_v19 = vsel %vm1969_vm3, %v1937_v13, %v2001_v16  ;;  %v1938_v20 = vadd.f32 %v4687_v55, %v1781_v10 }
 0x357   : > { %v1560_v21 = vpop.f32.mrb[54].mxu0  ;;  %3031 = vmatmul.mubr.msk.f32.vlgmr.msra.gmra.mrb[112].mxu0 %vm2075_vm2, %v2033_v19  ;;  %v4700_v22 = vpop.f32.mrb[102].mxu1 }
 0x358   : > { %v2002_v25 = vmul.f32 0.01, %v1938_v20  ;;  %v1786_v26 = vadd.f32 %v1785_v52, %v1560_v21  ;;  %v1562_v30 = vpop.f32.mrb[55].mxu0  ;;  %vm1970_vm4 = vcmp.gt.f32.partialorder %v1938_v20, 0.0  ;;  %v1827_v31 = vpop.f32.mrb[103].mxu1 }
 0x35a   : > { %v1939_v33 = vadd.f32 %v4687_v55, %v1786_v26  ;;  %v2034_v32 = vsel %vm1970_vm4, %v1938_v20, %v2002_v25 }
 0x35b   : > { %v1565_v34 = vpop.f32.mrb[56].mxu0  ;;  %3033 = vmatprep.mubr.msk.f32.mxu0 %vm2075_vm2, %v2034_v32  ;;  %v4704_v35 = vpop.f32.mrb[104].mxu1 }
 0x35c   : > { %v2003_v1 = vmul.f32 0.01, %v1939_v33  ;;  %v1791_v38 = vadd.f32 %v1790_v54, %v1565_v34  ;;  %v1567_v39 = vpop.f32.mrb[57].mxu0  ;;  %vm1971_vm5 = vcmp.gt.f32.partialorder %v1939_v33, 0.0  ;;  %v1832_v40 = vpop.f32.mrb[105].mxu1 }
 0x35e   : > { %v1940_v41 = vadd.f32 %v4687_v55, %v1791_v38  ;;  %v2035_v42 = vsel %vm1971_vm5, %v1939_v33, %v2003_v1 }
 0x35f   : > { %v1570_v36 = vpop.f32.mrb[58].mxu0  ;;  %3034 = vmatmul.mubr.msk.f32.gmra.mrb[114].mxu0 %vm2075_vm2, %v2035_v42  ;;  %v4708_v44 = vpop.f32.mrb[106].mxu1 }
 0x360   : > { %v2004_v45 = vmul.f32 0.01, %v1940_v41  ;;  %v1796_v46 = vadd.f32 %v4681_v56, %v1570_v36  ;;  %v1572_v47 = vpop.f32.mrb[59].mxu0  ;;  %vm1972_vm6 = vcmp.gt.f32.partialorder %v1940_v41, 0.0  ;;  %v1837_v48 = vpop.f32.mrb[107].mxu1 }
 0x362   : > { %v1941_v43 = vadd.f32 %v4687_v55, %v1796_v46  ;;  %v2036_v50 = vsel %vm1972_vm6, %v1940_v41, %v2004_v45 }
 0x363   : > { %v1575_v51 = vpop.f32.mrb[60].mxu0  ;;  %3036 = vmatprep.mubr.msk.f32.mxu0 %vm2075_vm2, %v2036_v50  ;;  %v4713_v52 = vpop.f32.mrb[108].mxu1 }
 0x364   : > { %v2005_v53 = vmul.f32 0.01, %v1941_v43  ;;  %v1801_v54 = vadd.f32 %v4683_v58, %v1575_v51  ;;  %v1577_v49 = vpop.f32.mrb[61].mxu0  ;;  %vm1973_vm7 = vcmp.gt.f32.partialorder %v1941_v43, 0.0  ;;  %v1842_v57 = vpop.f32.mrb[109].mxu1 }
 0x366   : > { %v1942_v28 = vadd.f32 %v4687_v55, %v1801_v54  ;;  %v2037_v56 = vsel %vm1973_vm7, %v1941_v43, %v2005_v53 }
 0x367   : > { %v1580_v29 = vpop.f32.mrb[62].mxu0  ;;  %3037 = vmatmul.mubr.msk.f32.gmra.mrb[116].mxu0 %vm2075_vm2, %v2037_v56  ;;  %v4718_v60 = vpop.f32.mrb[110].mxu1 }
 0x368   : > { %v2006_v63 = vmul.f32 0.01, %v1942_v28  ;;  %v1806_v0 = vadd.f32 %v4685_v59, %v1580_v29  ;;  %v1582_v2 = vpop.f32.mrb[63].mxu0  ;;  %vm1974_vm8 = vcmp.gt.f32.partialorder %v1942_v28, 0.0  ;;  %v1847_v3 = vpop.f32.mrb[111].mxu1 }
 0x36a   : > { %v1943_v61 = vadd.f32 %v4687_v55, %v1806_v0  ;;  %v2038_v58 = vsel %vm1974_vm8, %v1942_v28, %v2006_v63 }
 0x36b   : > { %v1585_v6 = vpop.f32.mrb[64].mxu0  ;;  %3039 = vmatprep.mubr.msk.f32.mxu0 %vm2075_vm2, %v2038_v58  ;;  %v4723_v7 = vpop.f32.mrb[112].mxu1 }
 0x36c   : > { %v2007_v8 = vmul.f32 0.01, %v1943_v61  ;;  %v1811_v9 = vadd.f32 %v4689_v62, %v1585_v6  ;;  %v1587_v11 = vpop.f32.mrb[65].mxu0  ;;  %vm1975_vm9 = vcmp.gt.f32.partialorder %v1943_v61, 0.0  ;;  %v1852_v4 = vpop.f32.mrb[113].mxu1 }
 0x36e   : > { %v1944_v13 = vadd.f32 %v4687_v55, %v1811_v9  ;;  %v2039_v59 = vsel %vm1975_vm9, %v1943_v61, %v2007_v8 }
 0x36f   : > { %v1590_v12 = vpop.f32.mrb[66].mxu0  ;;  %3040 = vmatmul.mubr.msk.f32.gmra.mrb[118].mxu0 %vm2075_vm2, %v2039_v59  ;;  %v4728_v14 = vpop.f32.mrb[114].mxu1 }
 0x370   : > { %v2008_v15 = vmul.f32 0.01, %v1944_v13  ;;  %v1816_v16 = vadd.f32 %v4692_v5, %v1590_v12  ;;  %v1592_v10 = vpop.f32.mrb[67].mxu0  ;;  %vm1976_vm10 = vcmp.gt.f32.partialorder %v1944_v13, 0.0  ;;  %v1857_v17 = vpop.f32.mrb[115].mxu1 }
 0x372   : > { %v1945_v18 = vadd.f32 %v4687_v55, %v1816_v16  ;;  %v2040_v62 = vsel %vm1976_vm10, %v1944_v13, %v2008_v15 }
 0x373   : > { %v1595_v19 = vpop.f32.mrb[68].mxu0  ;;  %3042 = vmatprep.mubr.msk.f32.mxu0 %vm2075_vm2, %v2040_v62  ;;  %v4733_v20 = vpop.f32.mrb[116].mxu1 }
 0x374   : > { %v2009_v21 = vmul.f32 0.01, %v1945_v18  ;;  %v1821_v25 = vadd.f32 %v4696_v37, %v1595_v19  ;;  %v1597_v26 = vpop.f32.mrb[69].mxu0  ;;  %vm1977_vm11 = vcmp.gt.f32.partialorder %v1945_v18, 0.0  ;;  %v1862_v30 = vpop.f32.mrb[117].mxu1 }
 0x376   : > { %v1946_v31 = vadd.f32 %v4687_v55, %v1821_v25  ;;  %v2041_v5 = vsel %vm1977_vm11, %v1945_v18, %v2009_v21 }
 0x377   : > { %v1600_v33 = vpop.f32.mrb[70].mxu0  ;;  %3043 = vmatmul.mubr.msk.f32.gmra.mrb[120].mxu0 %vm2075_vm2, %v2041_v5  ;;  %v4738_v32 = vpop.f32.mrb[118].mxu1 }
 0x378   : > { %v2010_v34 = vmul.f32 0.01, %v1946_v31  ;;  %v1826_v1 = vadd.f32 %v4700_v22, %v1600_v33  ;;  %v1602_v38 = vpop.f32.mrb[71].mxu0  ;;  %vm1978_vm12 = vcmp.gt.f32.partialorder %v1946_v31, 0.0  ;;  %v1867_v39 = vpop.f32.mrb[119].mxu1 }
 0x37a   : > { %v1947_v40 = vadd.f32 %v4687_v55, %v1826_v1  ;;  %v2042_v37 = vsel %vm1978_vm12, %v1946_v31, %v2010_v34 }
 0x37b   : > { %v1605_v41 = vpop.f32.mrb[72].mxu0  ;;  %3045 = vmatprep.mubr.msk.f32.mxu0 %vm2075_vm2, %v2042_v37  ;;  %v4743_v42 = vpop.f32.mrb[120].mxu1 }
 0x37c   : > { %v2011_v36 = vmul.f32 0.01, %v1947_v40  ;;  %v1831_v45 = vadd.f32 %v4704_v35, %v1605_v41  ;;  %v1607_v46 = vpop.f32.mrb[73].mxu0  ;;  %vm1979_vm13 = vcmp.gt.f32.partialorder %v1947_v40, 0.0  ;;  %v1872_v47 = vpop.f32.mrb[121].mxu1 }
 0x37e   : > { %v1948_v48 = vadd.f32 %v4687_v55, %v1831_v45  ;;  %v2043_v22 = vsel %vm1979_vm13, %v1947_v40, %v2011_v36 }
 0x37f   : > { %v1610_v43 = vpop.f32.mrb[74].mxu0  ;;  %3046 = vmatmul.mubr.msk.f32.gmra.mrb[122].mxu0 %vm2075_vm2, %v2043_v22  ;;  %v4748_v50 = vpop.f32.mrb[122].mxu1 }
 0x380   : > { %v2012_v51 = vmul.f32 0.01, %v1948_v48  ;;  %v1836_v53 = vadd.f32 %v4708_v44, %v1610_v43  ;;  %v1612_v54 = vpop.f32.mrb[75].mxu0  ;;  %vm1980_vm14 = vcmp.gt.f32.partialorder %v1948_v48, 0.0  ;;  %v1877_v49 = vpop.f32.mrb[123].mxu1 }
 0x382   : > { %v1949_v57 = vadd.f32 %v4687_v55, %v1836_v53  ;;  %v2044_v35 = vsel %vm1980_vm14, %v1948_v48, %v2012_v51 }
 0x383   : > { %v1615_v28 = vpop.f32.mrb[76].mxu0  ;;  %3048 = vmatprep.mubr.msk.f32.mxu0 %vm2075_vm2, %v2044_v35  ;;  %v4753_v56 = vpop.f32.mrb[124].mxu1 }
 0x384   : > { %v2013_v29 = vmul.f32 0.01, %v1949_v57  ;;  %v1841_v63 = vadd.f32 %v4713_v52, %v1615_v28  ;;  %v1617_v0 = vpop.f32.mrb[77].mxu0  ;;  %vm1981_vm15 = vcmp.gt.f32.partialorder %v1949_v57, 0.0  ;;  %v1882_v2 = vpop.f32.mrb[125].mxu1 }
 0x386   : > { %v1950_v3 = vadd.f32 %v4687_v55, %v1841_v63  ;;  %v2045_v44 = vsel %vm1981_vm15, %v1949_v57, %v2013_v29 }
 0x387   : > { %v1620_v61 = vpop.f32.mrb[78].mxu0  ;;  %3049 = vmatmul.mubr.msk.f32.gmra.mrb[124].mxu0 %vm2075_vm2, %v2045_v44  ;;  %v4758_v58 = vpop.f32.mrb[126].mxu1 }
 0x388   : > { %v2014_v6 = vmul.f32 0.01, %v1950_v3  ;;  %v1846_v8 = vadd.f32 %v4718_v60, %v1620_v61  ;;  %v1622_v9 = vpop.f32.mrb[79].mxu0  ;;  %v1887_v11 = vpop.f32.mrb[127].mxu1  ;;  %vm1982_vm0 = vcmp.gt.f32.partialorder %v1950_v3, 0.0 }
 0x38a   : > { %v1951_v4 = vadd.f32 %v4687_v55, %v1846_v8  ;;  %v2046_v52 = vsel %vm1982_vm0, %v1950_v3, %v2014_v6 }
 0x38b   : > { %v1625_v13 = vpop.f32.mrb[80].mxu0  ;;  %v4762_v59 = vpop.f32.mrb[128].mxu1  ;;  %3051 = vmatprep.mubr.msk.f32.mxu0 %vm2075_vm2, %v2046_v52 }
 0x38c   : > { %v2015_v12 = vmul.f32 0.01, %v1951_v4  ;;  %v1851_v15 = vadd.f32 %v4723_v7, %v1625_v13  ;;  %v1627_v16 = vpop.f32.mrb[81].mxu0  ;;  %v1892_v10 = vpop.f32.mrb[129].mxu1  ;;  %vm1983_vm1 = vcmp.gt.f32.partialorder %v1951_v4, 0.0 }
 0x38e   : > { %v1952_v17 = vadd.f32 %v4687_v55, %v1851_v15  ;;  %v2047_v60 = vsel %vm1983_vm1, %v1951_v4, %v2015_v12 }
 0x38f   : > { %v1630_v18 = vpop.f32.mrb[82].mxu0  ;;  %v4767_v62 = vpop.f32.mrb[130].mxu1  ;;  %3052 = vmatmul.mubr.msk.f32.gmra.mrb[126].mxu0 %vm2075_vm2, %v2047_v60 }
 0x390   : > { %v2016_v19 = vmul.f32 0.01, %v1952_v17  ;;  %v1856_v21 = vadd.f32 %v4728_v14, %v1630_v18  ;;  %v1632_v25 = vpop.f32.mrb[83].mxu0  ;;  %v1897_v26 = vpop.f32.mrb[131].mxu1  ;;  %vm1984_vm3 = vcmp.gt.f32.partialorder %v1952_v17, 0.0 }
 0x392   : > { %v1953_v30 = vadd.f32 %v4687_v55, %v1856_v21  ;;  %v2048_v7 = vsel %vm1984_vm3, %v1952_v17, %v2016_v19 }
 0x393   : > { %v1635_v31 = vpop.f32.mrb[84].mxu0  ;;  %v4772_v5 = vpop.f32.mrb[132].mxu1  ;;  %3054 = vmatprep.mubr.msk.f32.mxu0 %vm2075_vm2, %v2048_v7 }
 0x394   : > { %v2017_v33 = vmul.f32 0.01, %v1953_v30  ;;  %v1861_v34 = vadd.f32 %v4733_v20, %v1635_v31  ;;  %v1637_v1 = vpop.f32.mrb[85].mxu0  ;;  %v1902_v38 = vpop.f32.mrb[133].mxu1  ;;  %vm1985_vm4 = vcmp.gt.f32.partialorder %v1953_v30, 0.0 }
 0x396   : > { %v1954_v39 = vadd.f32 %v4687_v55, %v1861_v34  ;;  %v2049_v14 = vsel %vm1985_vm4, %v1953_v30, %v2017_v33 }
 0x397   : > { %v1640_v40 = vpop.f32.mrb[86].mxu0  ;;  %v4777_v37 = vpop.f32.mrb[134].mxu1  ;;  %3055 = vmatmul.mubr.msk.f32.gmra.mrb[128].mxu0 %vm2075_vm2, %v2049_v14 }
 0x398   : > { %v2018_v41 = vmul.f32 0.01, %v1954_v39  ;;  %v1866_v36 = vadd.f32 %v4738_v32, %v1640_v40  ;;  %v1642_v45 = vpop.f32.mrb[87].mxu0  ;;  %v1907_v46 = vpop.f32.mrb[135].mxu1  ;;  %vm1986_vm5 = vcmp.gt.f32.partialorder %v1954_v39, 0.0 }
 0x399   : > { %v2558_v46 = vld [vmem:[#allocation20 + $0x8] sm:$0xff] }
 0x39a   : > { %v1955_v47 = vadd.f32 %v4687_v55, %v1866_v36  ;;  %v2050_v20 = vsel %vm1986_vm5, %v1954_v39, %v2018_v41  ;;  %v2557_v39 = vld [vmem:[#allocation20] sm:$0xff] }
 0x39b   : > { %v1645_v48 = vpop.f32.mrb[88].mxu0  ;;  %v4782_v22 = vpop.f32.mrb[136].mxu1  ;;  %3057 = vmatprep.mubr.msk.f32.mxu0 %vm2075_vm2, %v2050_v20  ;;  %2563 = vperm.xlu0 %3372, %v2557_v39  }
 0x39c   : > { %v2019_v43 = vmul.f32 0.01, %v1955_v47  ;;  %v1871_v51 = vadd.f32 %v4743_v42, %v1645_v48  ;;  %v1647_v53 = vpop.f32.mrb[89].mxu0  ;;  %v1912_v54 = vpop.f32.mrb[137].mxu1  ;;  %vm1987_vm6 = vcmp.gt.f32.partialorder %v1955_v47, 0.0 }
 0x39e   : > { %v1956_v49 = vadd.f32 %v4687_v55, %v1871_v51  ;;  %v2051_v32 = vsel %vm1987_vm6, %v1955_v47, %v2019_v43 }
 0x39f   : > { %v1650_v57 = vpop.f32.mrb[90].mxu0  ;;  %v4787_v35 = vpop.f32.mrb[138].mxu1  ;;  %3058 = vmatmul.mubr.msk.f32.gmra.mrb[130].mxu0 %vm2075_vm2, %v2051_v32  ;;  %2568 = vperm.xlu0 %3372, %v2558_v46  }
 0x3a0   : > { %v2020_v28 = vmul.f32 0.01, %v1956_v49  ;;  %v1876_v29 = vadd.f32 %v4748_v50, %v1650_v57  ;;  %v1652_v63 = vpop.f32.mrb[91].mxu0  ;;  %v1917_v0 = vpop.f32.mrb[139].mxu1  ;;  %vm1988_vm7 = vcmp.gt.f32.partialorder %v1956_v49, 0.0 }
 0x3a2   : > { %v1957_v2 = vadd.f32 %v4687_v55, %v1876_v29  ;;  %v2052_v42 = vsel %vm1988_vm7, %v1956_v49, %v2020_v28 }
 0x3a3   : > { %v1655_v3 = vpop.f32.mrb[92].mxu0  ;;  %v4792_v44 = vpop.f32.mrb[140].mxu1  ;;  %3060 = vmatprep.mubr.msk.f32.mxu0 %vm2075_vm2, %v2052_v42 }
 0x3a4   : > { %v2021_v61 = vmul.f32 0.01, %v1957_v2  ;;  %v1881_v6 = vadd.f32 %v4753_v56, %v1655_v3  ;;  %v1657_v8 = vpop.f32.mrb[93].mxu0  ;;  %v1922_v9 = vpop.f32.mrb[141].mxu1  ;;  %vm1989_vm8 = vcmp.gt.f32.partialorder %v1957_v2, 0.0 }
 0x3a6   : > { %v1958_v11 = vadd.f32 %v4687_v55, %v1881_v6  ;;  %v2053_v50 = vsel %vm1989_vm8, %v1957_v2, %v2021_v61 }
 0x3a7   : > { %v1660_v4 = vpop.f32.mrb[94].mxu0  ;;  %v4797_v52 = vpop.f32.mrb[142].mxu1  ;;  %3061 = vmatmul.mubr.msk.f32.gmra.mrb[132].mxu0 %vm2075_vm2, %v2053_v50  ;;  %v2607_v50 = vld [vmem:[#allocation2] sm:$0x1] }
 0x3a8   : > { %v2022_v13 = vmul.f32 0.01, %v1958_v11  ;;  %v1886_v12 = vadd.f32 %v4758_v58, %v1660_v4  ;;  %v1662_v15 = vpop.f32.mrb[95].mxu0  ;;  %v1927_v16 = vpop.f32.mrb[143].mxu1  ;;  %vm1990_vm9 = vcmp.gt.f32.partialorder %v1958_v11, 0.0  ;;  %2610 = vperm.xlu0 %3372, %v2607_v50  }
 0x3aa   : > { %v1959_v10 = vadd.f32 %v4687_v55, %v1886_v12  ;;  %v2054_v56 = vsel %vm1990_vm9, %v1958_v11, %v2022_v13  ;;  %v4828_v13 = vld [vmem:[#allocation18] ss:$0 sm:$0xff] }
 0x3ab   : > { %v1665_v17 = vpop.f32.mrb[96].mxu0  ;;  %3063 = vmatprep.mubr.msk.f32.mxu0 %vm2075_vm2, %v2054_v56 }
 0x3ac   : > { %v2023_v60 = vmul.f32 0.01, %v1959_v10  ;;  %v1891_v18 = vadd.f32 %v4762_v59, %v1665_v17  ;;  %v1667_v19 = vpop.f32.mrb[97].mxu0  ;;  %vm1991_vm10 = vcmp.gt.f32.partialorder %v1959_v10, 0.0 }
 0x3ae   : > { %v1960_v21 = vadd.f32 %v4687_v55, %v1891_v18  ;;  %v2055_v25 = vsel %vm1991_vm10, %v1959_v10, %v2023_v60 }
 0x3af   : > { %v1670_v26 = vpop.f32.mrb[98].mxu0  ;;  %3064 = vmatmul.mubr.msk.f32.gmra.mrb[134].mxu0 %vm2075_vm2, %v2055_v25 }
 0x3b0   : > { %v2024_v58 = vmul.f32 0.01, %v1960_v21  ;;  %v1896_v30 = vadd.f32 %v4767_v62, %v1670_v26  ;;  %v1672_v7 = vpop.f32.mrb[99].mxu0  ;;  %vm1992_vm11 = vcmp.gt.f32.partialorder %v1960_v21, 0.0 }
 0x3b2   : > { %v1961_v31 = vadd.f32 %v4687_v55, %v1896_v30  ;;  %v2056_v33 = vsel %vm1992_vm11, %v1960_v21, %v2024_v58 }
 0x3b3   : > { %v1675_v34 = vpop.f32.mrb[100].mxu0  ;;  %3066 = vmatprep.mubr.msk.f32.mxu0 %vm2075_vm2, %v2056_v33 }
 0x3b4   : > { %v2025_v59 = vmul.f32 0.01, %v1961_v31  ;;  %v1901_v1 = vadd.f32 %v4772_v5, %v1675_v34  ;;  %v1677_v38 = vpop.f32.mrb[101].mxu0  ;;  %vm1993_vm12 = vcmp.gt.f32.partialorder %v1961_v31, 0.0 }
 0x3b6   : > { %v1962_v14 = vadd.f32 %v4687_v55, %v1901_v1  ;;  %v2057_v40 = vsel %vm1993_vm12, %v1961_v31, %v2025_v59 }
 0x3b7   : > { %v1680_v41 = vpop.f32.mrb[102].mxu0  ;;  %3067 = vmatmul.mubr.msk.f32.gmra.mrb[136].mxu0 %vm2075_vm2, %v2057_v40 }
 0x3b8   : > { %v2026_v62 = vmul.f32 0.01, %v1962_v14  ;;  %v1906_v36 = vadd.f32 %v4777_v37, %v1680_v41  ;;  %v1682_v45 = vpop.f32.mrb[103].mxu0  ;;  %vm1994_vm13 = vcmp.gt.f32.partialorder %v1962_v14, 0.0 }
 0x3ba   : > { %v1963_v47 = vadd.f32 %v4687_v55, %v1906_v36  ;;  %v2058_v20 = vsel %vm1994_vm13, %v1962_v14, %v2026_v62 }
 0x3bb   : > { %v1685_v5 = vpop.f32.mrb[104].mxu0  ;;  %3069 = vmatprep.mubr.msk.f32.mxu0 %vm2075_vm2, %v2058_v20 }
 0x3bc   : > { %v2027_v48 = vmul.f32 0.01, %v1963_v47  ;;  %v1911_v43 = vadd.f32 %v4782_v22, %v1685_v5  ;;  %v1687_v51 = vpop.f32.mrb[105].mxu0  ;;  %vm1995_vm14 = vcmp.gt.f32.partialorder %v1963_v47, 0.0 }
 0x3be   : > { %v1964_v53 = vadd.f32 %v4687_v55, %v1911_v43  ;;  %v2059_v54 = vsel %vm1995_vm14, %v1963_v47, %v2027_v48 }
 0x3bf   : > { %v1690_v49 = vpop.f32.mrb[106].mxu0  ;;  %3070 = vmatmul.mubr.msk.f32.gmra.mrb[138].mxu0 %vm2075_vm2, %v2059_v54 }
 0x3c0   : > { %v2028_v37 = vmul.f32 0.01, %v1964_v53  ;;  %v1916_v32 = vadd.f32 %v4787_v35, %v1690_v49  ;;  %v1692_v57 = vpop.f32.mrb[107].mxu0  ;;  %vm1996_vm15 = vcmp.gt.f32.partialorder %v1964_v53, 0.0 }
 0x3c2   : > { %v1965_v28 = vadd.f32 %v4687_v55, %v1916_v32  ;;  %v2060_v29 = vsel %vm1996_vm15, %v1964_v53, %v2028_v37 }
 0x3c3   : > { %v1695_v63 = vpop.f32.mrb[108].mxu0  ;;  %3072 = vmatprep.mubr.msk.f32.mxu0 %vm2075_vm2, %v2060_v29 }
 0x3c4   : > { %v2029_v22 = vmul.f32 0.01, %v1965_v28  ;;  %v1921_v0 = vadd.f32 %v4792_v44, %v1695_v63  ;;  %v1697_v2 = vpop.f32.mrb[109].mxu0  ;;  %vm1997_vm0 = vcmp.gt.f32.partialorder %v1965_v28, 0.0 }
 0x3c6   : > { %v1966_v42 = vadd.f32 %v4687_v55, %v1921_v0  ;;  %v2061_v3 = vsel %vm1997_vm0, %v1965_v28, %v2029_v22 }
 0x3c7   : > { %v1700_v61 = vpop.f32.mrb[110].mxu0  ;;  %3073 = vmatmul.mubr.msk.f32.gmra.mrb[140].mxu0 %vm2075_vm2, %v2061_v3 }
 0x3c8   : > { %v2030_v35 = vmul.f32 0.01, %v1966_v42  ;;  %v1926_v6 = vadd.f32 %v4797_v52, %v1700_v61  ;;  %v1702_v8 = vpop.f32.mrb[111].mxu0  ;;  %vm1998_vm1 = vcmp.gt.f32.partialorder %v1966_v42, 0.0 }
 0x3ca   : > { %v1967_v9 = vadd.f32 %v4687_v55, %v1926_v6  ;;  %v2062_v11 = vsel %vm1998_vm1, %v1966_v42, %v2030_v35 }
 0x3cb   : > { %3075 = vmatprep.mubr.msk.f32.mxu0 %vm2075_vm2, %v2062_v11 }
 0x3cc   : > { %v2031_v44 = vmul.f32 0.01, %v1967_v9  ;;  %vm1999_vm3 = vcmp.gt.f32.partialorder %v1967_v9, 0.0 }
 0x3ce   : > { %v2063_v4 = vsel %vm1999_vm3, %v1967_v9, %v2031_v44 }
 0x3cf   : > { %3076 = vmatmul.mubr.msk.f32.gmra.mrb[142].mxu0 %vm2075_vm2, %v2063_v4 }
 0x42a   : > { %v3032_v12 = vpop.f32.mrb[112].mxu0 }
 0x42b   : > { %v2238_v15 = vpop.f32.mrb[113].mxu0  ;;  %v2244_v52 = vadd.f32 %v3032_v12, %v4828_v13 }
 0x42c   : > { %v2239_v16 = vadd.f32 %v4828_v13, %v2238_v15 }
 0x42d   : > { %v2430_v55 = vmul.f32 0.01, %v2244_v52  ;;  %vm2398_vm5 = vcmp.gt.f32.partialorder %v2244_v52, 0.0 }
 0x42e   : > { %v2429_v10 = vmul.f32 0.01, %v2239_v16  ;;  %vm2397_vm4 = vcmp.gt.f32.partialorder %v2239_v16, 0.0 }
 0x42f   : > { %v2462_v21 = vsel %vm2398_vm5, %v2244_v52, %v2430_v55 }
 0x430   : > { %v2461_v56 = vsel %vm2397_vm4, %v2239_v16, %v2429_v10 }
 0x431   : > { %2493 = vxpose.xlu1.b32.start [1/16] (narrow) %v2461_v56, 32 }
 0x432   : > { %v3035_v17 = vpop.f32.mrb[114].mxu0 }
 0x433   : > { %v2248_v60 = vpop.f32.mrb[115].mxu0  ;;  %v2254_v18 = vadd.f32 %v3035_v17, %v4828_v13 }
 0x434   : > { %v2249_v19 = vadd.f32 %v4828_v13, %v2248_v60 }
 0x435   : > { %2494 = vxpose.xlu1.b32.cont [2/16] (narrow) %v2462_v21, 32  ;;  %v2432_v26 = vmul.f32 0.01, %v2254_v18  ;;  %vm2400_vm6 = vcmp.gt.f32.partialorder %v2254_v18, 0.0 }
 0x436   : > { %vm2399_vm2 = vcmp.gt.f32.partialorder %v2249_v19, 0.0  ;;  %v2431_v25 = vmul.f32 0.01, %v2249_v19 }
 0x437   : > { %v2464_v34 = vsel %vm2400_vm6, %v2254_v18, %v2432_v26 }
 0x438   : > { %v2463_v58 = vsel %vm2399_vm2, %v2249_v19, %v2431_v25 }
 0x439   : > { %2495 = vxpose.xlu1.b32.cont [3/16] (narrow) %v2463_v58, 32 }
 0x43a   : > { %v3038_v30 = vpop.f32.mrb[116].mxu0 }
 0x43b   : > { %v2258_v7 = vpop.f32.mrb[117].mxu0  ;;  %v2264_v31 = vadd.f32 %v3038_v30, %v4828_v13 }
 0x43c   : > { %v2259_v33 = vadd.f32 %v4828_v13, %v2258_v7 }
 0x43d   : > { %2496 = vxpose.xlu1.b32.cont [4/16] (narrow) %v2464_v34, 32  ;;  %v2434_v1 = vmul.f32 0.01, %v2264_v31  ;;  %vm2402_vm8 = vcmp.gt.f32.partialorder %v2264_v31, 0.0 }
 0x43e   : > { %vm2401_vm7 = vcmp.gt.f32.partialorder %v2259_v33, 0.0  ;;  %v2433_v59 = vmul.f32 0.01, %v2259_v33 }
 0x43f   : > { %v2466_v62 = vsel %vm2402_vm8, %v2264_v31, %v2434_v1 }
 0x440   : > { %v2465_v38 = vsel %vm2401_vm7, %v2259_v33, %v2433_v59 }
 0x441   : > { %2497 = vxpose.xlu1.b32.cont [5/16] (narrow) %v2465_v38, 32 }
 0x442   : > { %v3041_v39 = vpop.f32.mrb[118].mxu0 }
 0x443   : > { %v2268_v14 = vpop.f32.mrb[119].mxu0  ;;  %v2274_v40 = vadd.f32 %v3041_v39, %v4828_v13 }
 0x444   : > { %v2269_v41 = vadd.f32 %v4828_v13, %v2268_v14 }
 0x445   : > { %2498 = vxpose.xlu1.b32.cont [6/16] (narrow) %v2466_v62, 32  ;;  %v2436_v45 = vmul.f32 0.01, %v2274_v40  ;;  %vm2404_vm10 = vcmp.gt.f32.partialorder %v2274_v40, 0.0 }
 0x446   : > { %vm2403_vm9 = vcmp.gt.f32.partialorder %v2269_v41, 0.0  ;;  %v2435_v36 = vmul.f32 0.01, %v2269_v41 }
 0x447   : > { %v2468_v43 = vsel %vm2404_vm10, %v2274_v40, %v2436_v45 }
 0x448   : > { %v2467_v46 = vsel %vm2403_vm9, %v2269_v41, %v2435_v36 }
 0x449   : > { %2499 = vxpose.xlu1.b32.cont [7/16] (narrow) %v2467_v46, 32 }
 0x44a   : > { %v3044_v47 = vpop.f32.mrb[120].mxu0 }
 0x44b   : > { %v2278_v20 = vpop.f32.mrb[121].mxu0  ;;  %v2284_v5 = vadd.f32 %v3044_v47, %v4828_v13 }
 0x44c   : > { %v2279_v48 = vadd.f32 %v4828_v13, %v2278_v20 }
 0x44d   : > { %2500 = vxpose.xlu1.b32.cont [8/16] (narrow) %v2468_v43, 32  ;;  %v2438_v53 = vmul.f32 0.01, %v2284_v5  ;;  %vm2406_vm12 = vcmp.gt.f32.partialorder %v2284_v5, 0.0 }
 0x44e   : > { %vm2405_vm11 = vcmp.gt.f32.partialorder %v2279_v48, 0.0  ;;  %v2437_v51 = vmul.f32 0.01, %v2279_v48 }
 0x44f   : > { %v2470_v28 = vsel %vm2406_vm12, %v2284_v5, %v2438_v53 }
 0x450   : > { %v2469_v54 = vsel %vm2405_vm11, %v2279_v48, %v2437_v51 }
 0x451   : > { %2501 = vxpose.xlu1.b32.cont [9/16] (narrow) %v2469_v54, 32 }
 0x452   : > { %v3047_v49 = vpop.f32.mrb[122].mxu0 }
 0x453   : > { %v2288_v37 = vpop.f32.mrb[123].mxu0  ;;  %v2294_v32 = vadd.f32 %v3047_v49, %v4828_v13 }
 0x454   : > { %v2289_v57 = vadd.f32 %v4828_v13, %v2288_v37 }
 0x455   : > { %2502 = vxpose.xlu1.b32.cont [10/16] (narrow) %v2470_v28, 32  ;;  %v2440_v63 = vmul.f32 0.01, %v2294_v32  ;;  %vm2408_vm14 = vcmp.gt.f32.partialorder %v2294_v32, 0.0 }
 0x456   : > { %vm2407_vm13 = vcmp.gt.f32.partialorder %v2289_v57, 0.0  ;;  %v2439_v29 = vmul.f32 0.01, %v2289_v57 }
 0x457   : > { %v2472_v61 = vsel %vm2408_vm14, %v2294_v32, %v2440_v63 }
 0x458   : > { %v2471_v22 = vsel %vm2407_vm13, %v2289_v57, %v2439_v29 }
 0x459   : > { %2503 = vxpose.xlu1.b32.cont [11/16] (narrow) %v2471_v22, 32 }
 0x45a   : > { %v3050_v0 = vpop.f32.mrb[124].mxu0 }
 0x45b   : > { %v2298_v2 = vpop.f32.mrb[125].mxu0  ;;  %v2304_v42 = vadd.f32 %v3050_v0, %v4828_v13 }
 0x45c   : > { %v2299_v3 = vadd.f32 %v4828_v13, %v2298_v2 }
 0x45d   : > { %2504 = vxpose.xlu1.b32.cont [12/16] (narrow) %v2472_v61, 32  ;;  %v2442_v6 = vmul.f32 0.01, %v2304_v42  ;;  %vm2410_vm0 = vcmp.gt.f32.partialorder %v2304_v42, 0.0 }
 0x45e   : > { %vm2409_vm15 = vcmp.gt.f32.partialorder %v2299_v3, 0.0  ;;  %v2441_v35 = vmul.f32 0.01, %v2299_v3 }
 0x45f   : > { %v2474_v4 = vsel %vm2410_vm0, %v2304_v42, %v2442_v6 }
 0x460   : > { %v2473_v8 = vsel %vm2409_vm15, %v2299_v3, %v2441_v35 }
 0x461   : > { %2505 = vxpose.xlu1.b32.cont [13/16] (narrow) %v2473_v8, 32 }
 0x462   : > { %v3053_v9 = vpop.f32.mrb[126].mxu0 }
 0x463   : > { %v2308_v11 = vpop.f32.mrb[127].mxu0  ;;  %v2314_v50 = vadd.f32 %v3053_v9, %v4828_v13 }
 0x464   : > { %v2309_v44 = vadd.f32 %v4828_v13, %v2308_v11 }
 0x465   : > { %2506 = vxpose.xlu1.b32.cont [14/16] (narrow) %v2474_v4, 32  ;;  %v2444_v15 = vmul.f32 0.01, %v2314_v50  ;;  %vm2412_vm3 = vcmp.gt.f32.partialorder %v2314_v50, 0.0 }
 0x466   : > { %vm2411_vm1 = vcmp.gt.f32.partialorder %v2309_v44, 0.0  ;;  %v2443_v12 = vmul.f32 0.01, %v2309_v44 }
 0x467   : > { %v2476_v17 = vsel %vm2412_vm3, %v2314_v50, %v2444_v15 }
 0x468   : > { %v2475_v52 = vsel %vm2411_vm1, %v2309_v44, %v2443_v12 }
 0x469   : > { %2507 = vxpose.xlu1.b32.cont [15/16] (narrow) %v2475_v52, 32 }
 0x46a   : > { %v3056_v16 = vpop.f32.mrb[128].mxu0 }
 0x46b   : > { %v2318_v10 = vpop.f32.mrb[129].mxu0  ;;  %v2324_v55 = vadd.f32 %v3056_v16, %v4828_v13 }
 0x46c   : > { %v2319_v56 = vadd.f32 %v4828_v13, %v2318_v10 }
 0x46d   : > { %2508 = vxpose.xlu1.b32.end [16/16] (narrow) %v2476_v17, 32  ;;  %v2446_v18 = vmul.f32 0.01, %v2324_v55  ;;  %vm2414_vm5 = vcmp.gt.f32.partialorder %v2324_v55, 0.0 }
 0x46e   : > { %v2445_v60 = vmul.f32 0.01, %v2319_v56  ;;  %vm2413_vm4 = vcmp.gt.f32.partialorder %v2319_v56, 0.0 }
 0x46f   : > { %v2478_v30 = vsel %vm2414_vm5, %v2324_v55, %v2446_v18 }
 0x470   : > { %v2477_v19 = vsel %vm2413_vm4, %v2319_v56, %v2445_v60  ;;  %v2574_v60 = vpop.permute.xlu1 %2573  ;;  %vm2651_vm4 = vcmp.lt.s32.totalorder %v650_v23, 256 }
 0x471   : > { %2525 = vxpose.xlu0.b32.start [1/16] (narrow) %v2477_v19, 32 }
 0x472   : > { %v3059_v21 = vpop.f32.mrb[130].mxu0 }
 0x473   : > { %v2328_v25 = vpop.f32.mrb[131].mxu0  ;;  %v2334_v26 = vadd.f32 %v3059_v21, %v4828_v13  ;;  %v2564_v21 = vpop.permute.xlu0 %2563 }
 0x474   : > { %v2329_v58 = vadd.f32 %v4828_v13, %v2328_v25  ;;  %v2579_v18 = vpop.permute.xlu1 %2578 }
 0x475   : > { %2526 = vxpose.xlu0.b32.cont [2/16] (narrow) %v2478_v30, 32  ;;  %v2448_v31 = vmul.f32 0.01, %v2334_v26  ;;  %vm2416_vm6 = vcmp.gt.f32.partialorder %v2334_v26, 0.0 }
 0x476   : > { %vm2415_vm2 = vcmp.gt.f32.partialorder %v2329_v58, 0.0  ;;  %v2447_v7 = vmul.f32 0.01, %v2329_v58 }
 0x477   : > { %v2480_v39 = vsel %vm2416_vm6, %v2334_v26, %v2448_v31  ;;  %v2569_v26 = vpop.permute.xlu0 %2568 }
 0x478   : > { %v2479_v33 = vsel %vm2415_vm2, %v2329_v58, %v2447_v7 }
 0x479   : > { %2527 = vxpose.xlu0.b32.cont [3/16] (narrow) %v2479_v33, 32 }
 0x47a   : > { %v3062_v34 = vpop.f32.mrb[132].mxu0 }
 0x47b   : > { %v2338_v59 = vpop.f32.mrb[133].mxu0  ;;  %v2344_v1 = vadd.f32 %v3062_v34, %v4828_v13 }
 0x47c   : > { %v2339_v38 = vadd.f32 %v4828_v13, %v2338_v59 }
 0x47d   : > { %2528 = vxpose.xlu0.b32.cont [4/16] (narrow) %v2480_v39, 32  ;;  %v2450_v40 = vmul.f32 0.01, %v2344_v1  ;;  %vm2418_vm8 = vcmp.gt.f32.partialorder %v2344_v1, 0.0  ;;  %v2611_v39 = vpop.permute.xlu0 %2610 }
 0x47e   : > { %vm2417_vm7 = vcmp.gt.f32.partialorder %v2339_v38, 0.0  ;;  %v2449_v14 = vmul.f32 0.01, %v2339_v38 }
 0x47f   : > { %v2482_v47 = vsel %vm2418_vm8, %v2344_v1, %v2450_v40 }
 0x480   : > { %v2481_v41 = vsel %vm2417_vm7, %v2339_v38, %v2449_v14 }
 0x481   : > { %2529 = vxpose.xlu0.b32.cont [5/16] (narrow) %v2481_v41, 32 }
 0x482   : > { %v3065_v62 = vpop.f32.mrb[134].mxu0 }
 0x483   : > { %v2348_v36 = vpop.f32.mrb[135].mxu0  ;;  %v2354_v45 = vadd.f32 %v3065_v62, %v4828_v13 }
 0x484   : > { %v2349_v46 = vadd.f32 %v4828_v13, %v2348_v36 }
 0x485   : > { %2530 = vxpose.xlu0.b32.cont [6/16] (narrow) %v2482_v47, 32  ;;  %v2452_v5 = vmul.f32 0.01, %v2354_v45  ;;  %vm2420_vm10 = vcmp.gt.f32.partialorder %v2354_v45, 0.0 }
 0x486   : > { %vm2419_vm9 = vcmp.gt.f32.partialorder %v2349_v46, 0.0  ;;  %v2451_v20 = vmul.f32 0.01, %v2349_v46 }
 0x487   : > { %v2484_v49 = vsel %vm2420_vm10, %v2354_v45, %v2452_v5 }
 0x488   : > { %v2483_v48 = vsel %vm2419_vm9, %v2349_v46, %v2451_v20 }
 0x489   : > { %2531 = vxpose.xlu0.b32.cont [7/16] (narrow) %v2483_v48, 32 }
 0x48a   : > { %v3068_v43 = vpop.f32.mrb[136].mxu0 }
 0x48b   : > { %v2358_v51 = vpop.f32.mrb[137].mxu0  ;;  %v2364_v53 = vadd.f32 %v3068_v43, %v4828_v13 }
 0x48c   : > { %v2359_v54 = vadd.f32 %v4828_v13, %v2358_v51 }
 0x48d   : > { %2532 = vxpose.xlu0.b32.cont [8/16] (narrow) %v2484_v49, 32  ;;  %v2454_v32 = vmul.f32 0.01, %v2364_v53  ;;  %vm2422_vm12 = vcmp.gt.f32.partialorder %v2364_v53, 0.0 }
 0x48e   : > { %vm2421_vm11 = vcmp.gt.f32.partialorder %v2359_v54, 0.0  ;;  %v2453_v37 = vmul.f32 0.01, %v2359_v54 }
 0x48f   : > { %v2486_v0 = vsel %vm2422_vm12, %v2364_v53, %v2454_v32 }
 0x490   : > { %v2485_v57 = vsel %vm2421_vm11, %v2359_v54, %v2453_v37  ;;  %v2616_v37 = vrot.slane %v2611_v39, %v652_v27  ;;  %v3804_v27 = vmov 1966171168  }
 0x491   : > { %2533 = vxpose.xlu0.b32.cont [9/16] (narrow) %v2485_v57, 32 }
 0x492   : > { %v3071_v28 = vpop.f32.mrb[138].mxu0 }
 0x493   : > { %v2368_v29 = vpop.f32.mrb[139].mxu0  ;;  %v2374_v63 = vadd.f32 %v3071_v28, %v4828_v13 }
 0x494   : > { %v2369_v22 = vadd.f32 %v4828_v13, %v2368_v29 }
 0x495   : > { %2534 = vxpose.xlu0.b32.cont [10/16] (narrow) %v2486_v0, 32  ;;  %v2456_v42 = vmul.f32 0.01, %v2374_v63  ;;  %vm2424_vm14 = vcmp.gt.f32.partialorder %v2374_v63, 0.0 }
 0x496   : > { %vm2423_vm13 = vcmp.gt.f32.partialorder %v2369_v22, 0.0  ;;  %v2455_v2 = vmul.f32 0.01, %v2369_v22 }
 0x497   : > { %v2488_v9 = vsel %vm2424_vm14, %v2374_v63, %v2456_v42 }
 0x498   : > { %v2487_v3 = vsel %vm2423_vm13, %v2369_v22, %v2455_v2 }
 0x499   : > { %2535 = vxpose.xlu0.b32.cont [11/16] (narrow) %v2487_v3, 32 }
 0x49a   : > { %v3074_v61 = vpop.f32.mrb[140].mxu0 }
 0x49b   : > { %v2378_v35 = vpop.f32.mrb[141].mxu0  ;;  %v2384_v6 = vadd.f32 %v3074_v61, %v4828_v13 }
 0x49c   : > { %v2379_v8 = vadd.f32 %v4828_v13, %v2378_v35 }
 0x49d   : > { %2536 = vxpose.xlu0.b32.cont [12/16] (narrow) %v2488_v9, 32  ;;  %v2458_v50 = vmul.f32 0.01, %v2384_v6  ;;  %vm2426_vm0 = vcmp.gt.f32.partialorder %v2384_v6, 0.0  ;;  %v2635_v9 = vunpack.c.l.s4 %v3804_v27 }
 0x49e   : > { %vm2425_vm15 = vcmp.gt.f32.partialorder %v2379_v8, 0.0  ;;  %v2457_v11 = vmul.f32 0.01, %v2379_v8 }
 0x49f   : > { %v2490_v16 = vsel %vm2426_vm0, %v2384_v6, %v2458_v50 }
 0x4a0   : > { %v2489_v44 = vsel %vm2425_vm15, %v2379_v8, %v2457_v11  ;;  %v2636_v11 = vunpack.c.0.s8 %v2635_v9 }
 0x4a1   : > { %2537 = vxpose.xlu0.b32.cont [13/16] (narrow) %v2489_v44, 32 }
 0x4a2   : > { %v3077_v4 = vpop.f32.mrb[142].mxu0  ;;  %v2639_v44 = vsub.s32 %v2636_v11, %v4495_v24 }
 0x4a3   : > { %v2388_v12 = vpop.f32.mrb[143].mxu0  ;;  %v2394_v15 = vadd.f32 %v3077_v4, %v4828_v13 }
 0x4a4   : > { %v2389_v52 = vadd.f32 %v4828_v13, %v2388_v12 }
 0x4a5   : > { %2538 = vxpose.xlu0.b32.cont [14/16] (narrow) %v2490_v16, 32  ;;  %v2460_v55 = vmul.f32 0.01, %v2394_v15  ;;  %vm2428_vm3 = vcmp.gt.f32.partialorder %v2394_v15, 0.0 }
 0x4a6   : > { %vm2427_vm1 = vcmp.gt.f32.partialorder %v2389_v52, 0.0  ;;  %v2459_v10 = vmul.f32 0.01, %v2389_v52 }
 0x4a7   : > { %v2492_v17 = vsel %vm2428_vm3, %v2394_v15, %v2460_v55 }
 0x4a8   : > { %v2491_v56 = vsel %vm2427_vm1, %v2389_v52, %v2459_v10 }
 0x4a9   : > { %2539 = vxpose.xlu0.b32.cont [15/16] (narrow) %v2491_v56, 32 }
 0x4ad   : > { %2540 = vxpose.xlu0.b32.end [16/16] (narrow) %v2492_v17, 32 }
 0x4b1   : > { %v2509_v19 = vpop.trf.xlu1 }
 0x4b2   : > { %v2581_v30 = vmul.f32 %v2564_v21, %v2509_v19 }
 0x4b5   : > { %v2510_v25 = vpop.trf.xlu1 }
 0x4b6   : > { %v2583_v7 = vmul.f32 %v2569_v26, %v2510_v25 }
 0x4b8   : > { %v2589_v13 = vadd.f32 %v2583_v7, %v2581_v30 }
 0x4b9   : > { %v2511_v58 = vpop.trf.xlu1 }
 0x4ba   : > { %v2585_v31 = vmul.f32 %v2574_v60, %v2511_v58 }
 0x4bc   : > { %v2590_v34 = vadd.f32 %v2589_v13, %v2585_v31 }
 0x4bd   : > { %v2512_v33 = vpop.trf.xlu1 }
 0x4be   : > { %v2587_v59 = vmul.f32 %v2579_v18, %v2512_v33 }
 0x4c0   : > { %v2591_v1 = vadd.f32 %v2590_v34, %v2587_v59 }
 0x4c2   : > { %v2592_v38 = vrot.slane %v2591_v1, 4 }
 0x4c4   : > { %v2593_v14 = vadd.f32 %v2592_v38, %v2591_v1 }
 0x4c6   : > { %v2594_v41 = vrot.slane %v2593_v14, 2 }
 0x4c8   : > { %v2595_v45 = vadd.f32 %v2594_v41, %v2593_v14 }
 0x4ca   : > { %v2596_v48 = vrot.slane %v2595_v45, 1 }
 0x4cc   : > { %v2597_v49 = vadd.f32 %v2596_v48, %v2595_v45 }
 0x4ce   : > { %v2617_v28 = vadd.f32 %v2616_v37, %v2597_v49 }
 0x4d0   : > { %v2976_v22 = vmul.f32 -1.442695, %v2617_v28 }
 0x4d2   : > { %3374 = vpow2.f32 %v2976_v22 }
 0x4dc   : > { %v3375_v61 = vpop.eup %3374 }
 0x4dd   : > { %v2625_v35 = vadd.f32 1.0, %v3375_v61 }
 0x4f1   : > { %v2541_v40 = vpop.trf.xlu0 }
 0x4f2   : > { %v2582_v47 = vmul.f32 %v2564_v21, %v2541_v40 }
 0x4f5   : > { %v2542_v62 = vpop.trf.xlu0 }
 0x4f6   : > { %v2584_v36 = vmul.f32 %v2569_v26, %v2542_v62 }
 0x4f8   : > { %v2598_v5 = vadd.f32 %v2584_v36, %v2582_v47 }
 0x4f9   : > { %v2543_v46 = vpop.trf.xlu0 }
 0x4fa   : > { %v2586_v20 = vmul.f32 %v2574_v60, %v2543_v46 }
 0x4fc   : > { %v2599_v51 = vadd.f32 %v2598_v5, %v2586_v20 }
 0x4fd   : > { %v2544_v43 = vpop.trf.xlu0 }
 0x4fe   : > { %v2588_v53 = vmul.f32 %v2579_v18, %v2544_v43 }
 0x500   : > { %v2600_v54 = vadd.f32 %v2599_v51, %v2588_v53 }
 0x502   : > { %v2601_v32 = vrot.slane %v2600_v54, 4 }
 0x504   : > { %v2602_v57 = vadd.f32 %v2601_v32, %v2600_v54 }
 0x506   : > { %v2603_v29 = vrot.slane %v2602_v57, 2 }
 0x508   : > { %v2604_v63 = vadd.f32 %v2603_v29, %v2602_v57 }
 0x50a   : > { %v2605_v0 = vrot.slane %v2604_v63, 1 }
 0x50c   : > { %v2606_v2 = vadd.f32 %v2605_v0, %v2604_v63 }
 0x50e   : > { %v2618_v42 = vadd.f32 %v2616_v37, %v2606_v2 }
 0x510   : > { %v2977_v3 = vmul.f32 -1.442695, %v2618_v42 }
 0x512   : > { %3376 = vpow2.f32 %v2977_v3 }
 0x513   : > { %3378 = vrcp.f32 %v2625_v35 }
 0x51c   : > { %v3377_v6 = vpop.eup %3376 }
 0x51d   : > { %v2626_v8 = vadd.f32 1.0, %v3377_v6  ;;  %v3379_v50 = vpop.eup %3378 }
 0x51f   : > { %3380 = vrcp.f32 %v2626_v8 }
 0x529   : > { %v3381_v4 = vpop.eup %3380 }
 0x52a   : > { %v2633_v12 = vcombine.low %v3379_v50, %v3381_v4 }
 0x52c   : > { %v2640_v15 = vrot.slane %v2633_v12, %v2639_v44 }
 0x52e   : > { %v2647_v52 = vrot.slane %v2640_v15, %v2639_v44 }
 0x530   : > { %2653 = vst.msk [vmem:[%s597_s3] sm:$0x3] %vm2651_vm4, %v2647_v52 }
 0x531   : > { %3707 = shalt.err (!%p3704_p13)
}
 0x532   : > { %s3708_s30 = scalar_lea.hbm %s4871_s19, 32  ;;  %s3712_s27 = scalar_lea.hbm %s4980_s6, 64 }
 0x533   : > { %p3709_p1 = scmp.ne.s32.totalorder %s4871_s19, %s3708_s30  ;;  %p3713_p2 = scmp.lt.u32.totalorder %s4871_s19, %s4980_s6 }
 0x534   : > { %p3714_p6 = scmp.lt.u32.totalorder %s3712_s27, %s3708_s30  ;;  %p3716_p5 = scmp.lt.u32.totalorder %s3708_s30, %s4871_s19 }
 0x535   : > { %p3710_p3 = pnand %p3709_p1, %p4981_p9 }
 0x536   : > { %p3715_p10 = por %p3714_p6, %p3713_p2 }
 0x537   : > { %p3711_p7 = pneg %p3710_p3 }
 0x538   : > { %p3717_p4 = por %p3716_p5, %p3715_p10 }
 0x53a   : > { %p3718_p8 = pnand %p3717_p4, %p3711_p7 }
 0x53c   : > { %3721 = shalt.err (!%p3718_p8)
}
 0x53d   : > { %3262 = dma.vmem_to_hbm [thread:$0]  (%p4981_p9), %s4873_s16, 32, %s4871_s19, %s2655_s15  }
 0x53e PF: > { %s2681_s5 = sand.u32 1, %s3772_s23   ;;  %p4982_p11 = scmp.ne.s32.totalorder %s4962_s2, 0 }
 0x53f   : > { %p4983_p0 = scmp.ge.s32.totalorder %s3784_s26, 2  ;;  %s2682_s20 = scalar_lea.sflag [#allocation5], %s2681_s5 }
 0x541   : > { %p3300_p12 = pnand %p4983_p0, %p4982_p11 }
 0x543   : > { %3767 = dma.done.wait (!%p3300_p12), %s2682_s20, 32  }
 0x544   : > { %3769 = vsyncadd (!%p3300_p12), %s2682_s20, 4294967264  ;;  %p34_p13 = scmp.ge.s32.totalorder %s4116_s22, 4   ;;  %s4984_s23 = smov %s3776_s24 }
 0x545   : > { %s4985_s24 = smov %s3780_s25  ;;  %s4986_s25 = smov %s4128_s29 }
 0x546   : > { %s4987_s26 = smov %s4116_s22  ;;  %36 = sbr.rel (!%p34_p13) target bundleno = 22 (0x16), region = 162 }
 0x54d   :  { %2687 = vsyncpa [#allocation4], 1 }
 0x54e   :  { %2689 = vsyncpa [#allocation4 + $0x1], 1 }
 0x54f   :  { %2690 = vsyncpa [#allocation7], 1 }
 0x550   :  { %2692 = vsyncpa [#allocation7 + $0x1], 1 }
 0x551   :  { %2693 = vsyncpa [#allocation10], 1 }
 0x552   :  { %2694 = vsyncpa [#allocation13], 1 }
 0x553   :  { %2695 = vsyncpa [#allocation16], 1 }
 0x554   :  { %2696 = vsyncpa [#allocation19], 1 }
 0x555   :  { %2697 = vsyncpa [#allocation5], 1 }
 0x556   :  { %2699 = vsyncpa [#allocation5 + $0x1], 1 }

</bundles_post_ra>
